<compile_context>
chip_gen: v6e
topology: v6e:2x2x1
jax: 0.10.0
libtpu: 0.0.40
codegen_flags: <defaults>
</compile_context>

<pallas_src>
import functools

import jax
import jax.numpy as jnp
from jax import lax
from jax.experimental import pallas as pl
from jax.experimental.pallas import tpu as pltpu


def _round_up(x, m):
    return (x + m - 1) // m * m


def _res_block_kernel(
    x_ref,       # (B, Cin, Pimg)    bf16  zero-padded, flattened inputs
    w1c_ref,     # (2*Cout, 9*Cin)   bf16  [BN1-folded conv1 ; identity at center tap]
    b1c_ref,     # (2*Cout, 1)       f32   [BN1 shift ; identity bias]
    w2_ref,      # (Cout, 9*Cout)    bf16  BN2-folded conv2 weights
    b2_ref,      # (Cout, 1)         f32   BN2 shift
    o_ref,       # (B, Cout, M)      f32   output (interior rows, padded cols)
    col1_ref,    # scratch VMEM (9*Cin,  B*M)   bf16  im2col for conv1
    col2_ref,    # scratch VMEM (9*Cout, B*M)   bf16  im2col for conv2
    h1_ref,      # scratch VMEM (B, Cout, Pimg) bf16  zero-padded conv1 output
    *, B, Cin, Cout, W, Wp2, M, BASE,
):
    BM = B * M

    # Zero the padded conv1 scratch every step (cheap).  Pad taps read zeros,
    # and this stays correct if the grid axis is split across TensorCores.
    h1_ref[...] = jnp.zeros_like(h1_ref)

    # Lane mask of real (non-padding) output columns inside each image row.
    col = lax.broadcasted_iota(jnp.int32, (1, BM), 1) % Wp2
    valid = jnp.logical_and(col >= 1, col <= W)

    # ---- im2col for conv1: 9 shifted (Cin, M) views stacked along K ---------
    for k in range(9):
        dy, dx = k // 3, k % 3
        off = (dy - 1) * Wp2 + (dx - 1)
        for b in range(B):
            col1_ref[k * Cin:(k + 1) * Cin, b * M:(b + 1) * M] = (
                x_ref[b, :, BASE + off:BASE + off + M])

    # ---- conv1 (3x3, BN1 folded) + identity 1x1 conv fused in ONE matmul ----
    a = jnp.dot(w1c_ref[...], col1_ref[...],
                preferred_element_type=jnp.float32) + b1c_ref[...]
    h1 = jnp.maximum(a[:Cout], 0.0)                        # BN1 shift + ReLU
    h1 = jnp.where(valid, h1, 0.0).astype(h1_ref.dtype)    # zero pad columns
    idt = a[Cout:]                                          # identity (+bias)
    for b in range(B):
        h1_ref[b, :, BASE:BASE + M] = h1[:, b * M:(b + 1) * M]

    # ---- im2col for conv2 ----------------------------------------------------
    for k in range(9):
        dy, dx = k // 3, k % 3
        off = (dy - 1) * Wp2 + (dx - 1)
        for b in range(B):
            col2_ref[k * Cout:(k + 1) * Cout, b * M:(b + 1) * M] = (
                h1_ref[b, :, BASE + off:BASE + off + M])

    # ---- conv2 (3x3, BN2 folded) + ReLU, skip add, final ReLU ----------------
    a2 = jnp.dot(w2_ref[...], col2_ref[...],
                 preferred_element_type=jnp.float32) + b2_ref[...]
    out = jnp.maximum(jnp.maximum(a2, 0.0) + idt, 0.0)
    for b in range(B):
        o_ref[b, :, :] = out[:, b * M:(b + 1) * M]


def res_block(x, W1, W2, Wid, bid,
              gamma1, beta1, mean1, var1,
              gamma2, beta2, mean2, var2,
              *, eps=1e-5, block_b=None):
    """x: (N, Cin, H, W) f32; conv weights in PyTorch OIHW layout.
    Returns (N, Cout, H, W) f32.  BatchNorm uses inference (running-stat)
    semantics, folded into the conv weights."""
    N, Cin, H, W = x.shape
    Cout = W1.shape[0]

    # ---- fold BN (inference) into conv weights / per-channel shifts ---------
    scale1 = gamma1 / jnp.sqrt(var1 + eps)
    shift1 = beta1 - mean1 * scale1
    scale2 = gamma2 / jnp.sqrt(var2 + eps)
    shift2 = beta2 - mean2 * scale2

    # conv1 (BN1 scale folded), tap-major K: (Cout, ky, kx, Cin) -> (Cout, 9*Cin)
    w1_k = jnp.transpose(W1 * scale1[:, None, None, None],
                         (0, 2, 3, 1)).reshape(Cout, 9 * Cin)
    # identity 1x1 conv embedded at the center tap (k == 4) of the same K axis
    wid_embed = jnp.zeros((Cout, 3, 3, Cin), W1.dtype)
    wid_embed = wid_embed.at[:, 1, 1, :].set(Wid[:, :, 0, 0])
    wid_k = wid_embed.reshape(Cout, 9 * Cin)
    w1c = jnp.concatenate([w1_k, wid_k], axis=0).astype(jnp.bfloat16)
    b1c = jnp.concatenate([shift1, bid], axis=0).reshape(2 * Cout, 1)
    b1c = b1c.astype(jnp.float32)

    w2_k = jnp.transpose(W2 * scale2[:, None, None, None],
                         (0, 2, 3, 1)).reshape(Cout, 9 * Cout).astype(jnp.bfloat16)
    b2 = shift2.reshape(Cout, 1).astype(jnp.float32)

    # ---- flattened, zero-padded activation layout ----------------------------
    Wp2 = _round_up(W + 2, 8)          # padded width (>= W+2, multiple of 8)
    Hp2 = H + 2
    P = Hp2 * Wp2                      # flattened padded image length
    M = H * Wp2                        # interior rows x padded width (per image)
    BASE = _round_up(Wp2 + 1, 128)     # 128-aligned flat index of 1st interior pos
    pad_pre = BASE - Wp2
    Pimg = _round_up(BASE + M + Wp2 + 1, 128)   # per-image flattened buffer len

    if block_b is None:
        block_b = next(b for b in (8, 4, 2, 1) if N % b == 0)
    assert N % block_b == 0
    B = block_b

    # Glue: NCHW -> zero-padded, flattened, channels-major (N, Cin, Pimg) bf16.
    xp = jnp.pad(x, ((0, 0), (0, 0), (1, 1), (1, Wp2 - W - 1)))
    xf = xp.reshape(N, Cin, P)
    xf = jnp.pad(xf, ((0, 0), (0, 0), (pad_pre, Pimg - pad_pre - P)))
    xf = xf.astype(jnp.bfloat16)

    kernel = functools.partial(
        _res_block_kernel,
        B=B, Cin=Cin, Cout=Cout, W=W, Wp2=Wp2, M=M, BASE=BASE)

    out = pl.pallas_call(
        kernel,
        out_shape=jax.ShapeDtypeStruct((N, Cout, M), jnp.float32),
        grid_spec=pltpu.PrefetchScalarGridSpec(
            num_scalar_prefetch=0,
            grid=(N // B,),
            in_specs=[
                pl.BlockSpec((B, Cin, Pimg), lambda g: (g, 0, 0)),
                pl.BlockSpec((2 * Cout, 9 * Cin), lambda g: (0, 0)),
                pl.BlockSpec((2 * Cout, 1), lambda g: (0, 0)),
                pl.BlockSpec((Cout, 9 * Cout), lambda g: (0, 0)),
                pl.BlockSpec((Cout, 1), lambda g: (0, 0)),
            ],
            out_specs=pl.BlockSpec((B, Cout, M), lambda g: (g, 0, 0)),
            scratch_shapes=[
                pltpu.VMEM((9 * Cin, B * M), jnp.bfloat16),
                pltpu.VMEM((9 * Cout, B * M), jnp.bfloat16),
                pltpu.VMEM((B, Cout, Pimg), jnp.bfloat16),
            ],
        ),
        compiler_params=pltpu.CompilerParams(
            dimension_semantics=("parallel",)),
    )(xf, w1c, b1c, w2_k, b2)

    # Glue: drop padding columns; layout is already NCHW.
    out = out.reshape(N, Cout, H, Wp2)[:, :, :, 1:W + 1]
    return out


if __name__ == "__main__":
    N, Cin, H, W = 2, 4, 16, 16
    Cout = 8
    eps = 1e-5

    key = jax.random.PRNGKey(0)
    ks = jax.random.split(key, 13)

    # Deterministic synthetic parameters (PyTorch layouts: OIHW conv weights).
    W1 = 0.20 * jax.random.normal(ks[0], (Cout, Cin, 3, 3), jnp.float32)
    W2 = 0.15 * jax.random.normal(ks[1], (Cout, Cout, 3, 3), jnp.float32)
    Wid = 0.30 * jax.random.normal(ks[2], (Cout, Cin, 1, 1), jnp.float32)
    bid = 0.10 * jax.random.normal(ks[3], (Cout,), jnp.float32)
    gamma1 = 1.0 + 0.1 * jax.random.normal(ks[4], (Cout,), jnp.float32)
    beta1 = 0.1 * jax.random.normal(ks[5], (Cout,), jnp.float32)
    mean1 = 0.05 * jax.random.normal(ks[6], (Cout,), jnp.float32)
    var1 = 1.0 + 0.1 * jax.random.uniform(ks[7], (Cout,), jnp.float32)
    gamma2 = 1.0 + 0.1 * jax.random.normal(ks[8], (Cout,), jnp.float32)
    beta2 = 0.1 * jax.random.normal(ks[9], (Cout,), jnp.float32)
    mean2 = 0.05 * jax.random.normal(ks[10], (Cout,), jnp.float32)
    var2 = 1.0 + 0.1 * jax.random.uniform(ks[11], (Cout,), jnp.float32)

    x = jax.random.normal(ks[12], (N, Cin, H, W), jnp.float32)

    out = res_block(x, W1, W2, Wid, bid,
                    gamma1, beta1, mean1, var1,
                    gamma2, beta2, mean2, var2, eps=eps)
    out = jax.block_until_ready(out)

    # Pure-JAX f32 reference (same math, XLA convs) for a correctness check.
    scale1 = gamma1 / jnp.sqrt(var1 + eps)
    shift1 = beta1 - mean1 * scale1
    scale2 = gamma2 / jnp.sqrt(var2 + eps)
    shift2 = beta2 - mean2 * scale2

    def reference(x):
        def conv(a, w, pad):
            return lax.conv_general_dilated(
                a, w, (1, 1), ((pad, pad), (pad, pad)),
                dimension_numbers=("NCHW", "OIHW", "NCHW"))

        h = jnp.maximum(conv(x, W1, 1) * scale1[None, :, None, None]
                        + shift1[None, :, None, None], 0.0)
        h = jnp.maximum(conv(h, W2, 1) * scale2[None, :, None, None]
                        + shift2[None, :, None, None], 0.0)
        idt = conv(x, Wid, 0) + bid[None, :, None, None]
        return jnp.maximum(h + idt, 0.0)

    ref = jax.block_until_ready(reference(x))

    assert out.shape == (N, Cout, H, W), out.shape
    # bf16 matmul operands with f32 accumulation vs the f32 reference -> the
    # tolerance is loosened accordingly.
    max_err = float(jnp.max(jnp.abs(out - ref)))
    assert jnp.allclose(out, ref, rtol=5e-2, atol=5e-2), max_err

    print("KERNEL_OK")
</pallas_src>

<mosaic_0001>
module attributes {stable_mosaic.version = 11 : i64} {
  func.func @_res_block_kernel(%arg0: i32, %arg1: memref<2x4x640xbf16, #tpu.memory_space<vmem>>, %arg2: memref<16x36xbf16, #tpu.memory_space<vmem>>, %arg3: memref<16x1xf32, #tpu.memory_space<vmem>>, %arg4: memref<8x72xbf16, #tpu.memory_space<vmem>>, %arg5: memref<8x1xf32, #tpu.memory_space<vmem>>, %arg6: memref<2x8x384xf32, #tpu.memory_space<vmem>>, %arg7: memref<36x768xbf16, #tpu.memory_space<vmem>>, %arg8: memref<72x768xbf16, #tpu.memory_space<vmem>>, %arg9: memref<2x8x640xbf16, #tpu.memory_space<vmem>>) attributes {dimension_semantics = [#tpu.dimension_semantics<parallel>], iteration_bounds = array<i64: 1>, scalar_prefetch = 0 : i64, scratch_operands = 3 : i64, tpu.core_type = #tpu.core_type<tc>, window_params = [{transform_indices = @transform_0, window_bounds = array<i64: 2, 4, 640>}, {pipeline_mode = #tpu.pipeline_mode<synchronous>, transform_indices = @transform_1, window_bounds = array<i64: 16, 36>}, {pipeline_mode = #tpu.pipeline_mode<synchronous>, transform_indices = @transform_2, window_bounds = array<i64: 16, 1>}, {pipeline_mode = #tpu.pipeline_mode<synchronous>, transform_indices = @transform_3, window_bounds = array<i64: 8, 72>}, {pipeline_mode = #tpu.pipeline_mode<synchronous>, transform_indices = @transform_4, window_bounds = array<i64: 8, 1>}, {transform_indices = @transform_5, window_bounds = array<i64: 2, 8, 384>}]} {
    %cst = arith.constant 0.000000e+00 : bf16
    %0 = vector.broadcast %cst : bf16 to vector<2x8x640xbf16>
    %c0 = arith.constant 0 : index
    %c0_0 = arith.constant 0 : index
    %c0_1 = arith.constant 0 : index
    %1 = vector.load %arg9[%c0, %c0_0, %c0_1] : memref<2x8x640xbf16, #tpu.memory_space<vmem>>, vector<2x8x640xbf16>
    tpu.vector_store %arg9[%c0, %c0_0, %c0_1], %0 {strides = array<i32>} : memref<2x8x640xbf16, #tpu.memory_space<vmem>>, vector<2x8x640xbf16>,
    %2 = tpu.iota {dimensions = array<i32: 1>} : vector<1x768xi32>
    %c24_i32 = arith.constant 24 : i32
    %c0_i32 = arith.constant 0 : i32
    %3 = arith.cmpi eq, %c24_i32, %c0_i32 : i32
    %c1_i32 = arith.constant 1 : i32
    %4 = arith.select %3, %c1_i32, %c24_i32 : i32
    %5 = vector.broadcast %4 : i32 to vector<1x768xi32>
    %6 = arith.remsi %2, %5 : vector<1x768xi32>
    %c0_i32_2 = arith.constant 0 : i32
    %7 = vector.broadcast %c0_i32_2 : i32 to vector<1x768xi32>
    %8 = arith.cmpi ne, %6, %7 : vector<1x768xi32>
    %c0_i32_3 = arith.constant 0 : i32
    %9 = vector.broadcast %c0_i32_3 : i32 to vector<1x768xi32>
    %10 = arith.cmpi slt, %6, %9 : vector<1x768xi32>
    %c0_i32_4 = arith.constant 0 : i32
    %11 = arith.cmpi slt, %4, %c0_i32_4 : i32
    %12 = vector.broadcast %11 : i1 to vector<1x768xi1>
    %13 = vector.broadcast %12 : vector<1x768xi1> to vector<1x768xi1>
    %14 = arith.xori %10, %13 : vector<1x768xi1>
    %15 = arith.andi %14, %8 : vector<1x768xi1>
    %16 = vector.broadcast %4 : i32 to vector<1x768xi32>
    %17 = arith.addi %6, %16 : vector<1x768xi32>
    %18 = arith.select %15, %17, %6 : vector<1x768xi1>, vector<1x768xi32>
    %c1_i32_5 = arith.constant 1 : i32
    %19 = vector.broadcast %c1_i32_5 : i32 to vector<1x768xi32>
    %20 = arith.cmpi sge, %18, %19 : vector<1x768xi32>
    %c16_i32 = arith.constant 16 : i32
    %21 = vector.broadcast %c16_i32 : i32 to vector<1x768xi32>
    %22 = arith.cmpi sle, %18, %21 : vector<1x768xi32>
    %23 = arith.andi %20, %22 : vector<1x768xi1>
    %c0_6 = arith.constant 0 : index
    %c0_7 = arith.constant 0 : index
    %c103 = arith.constant 103 : index
    %24 = vector.load %arg1[%c0_6, %c0_7, %c103] : memref<2x4x640xbf16, #tpu.memory_space<vmem>>, vector<1x4x384xbf16>
    %25 = vector.shape_cast %24 : vector<1x4x384xbf16> to vector<4x384xbf16>
    %c0_8 = arith.constant 0 : index
    %c0_9 = arith.constant 0 : index
    %26 = vector.load %arg7[%c0_8, %c0_9] : memref<36x768xbf16, #tpu.memory_space<vmem>>, vector<4x384xbf16>
    tpu.vector_store %arg7[%c0_8, %c0_9], %25 {strides = array<i32>} : memref<36x768xbf16, #tpu.memory_space<vmem>>, vector<4x384xbf16>,
    %c1 = arith.constant 1 : index
    %c0_10 = arith.constant 0 : index
    %c103_11 = arith.constant 103 : index
    %27 = vector.load %arg1[%c1, %c0_10, %c103_11] : memref<2x4x640xbf16, #tpu.memory_space<vmem>>, vector<1x4x384xbf16>
    %28 = vector.shape_cast %27 : vector<1x4x384xbf16> to vector<4x384xbf16>
    %c0_12 = arith.constant 0 : index
    %c384 = arith.constant 384 : index
    %29 = vector.load %arg7[%c0_12, %c384] : memref<36x768xbf16, #tpu.memory_space<vmem>>, vector<4x384xbf16>
    tpu.vector_store %arg7[%c0_12, %c384], %28 {strides = array<i32>} : memref<36x768xbf16, #tpu.memory_space<vmem>>, vector<4x384xbf16>,
    %c0_13 = arith.constant 0 : index
    %c0_14 = arith.constant 0 : index
    %c104 = arith.constant 104 : index
    %30 = vector.load %arg1[%c0_13, %c0_14, %c104] : memref<2x4x640xbf16, #tpu.memory_space<vmem>>, vector<1x4x384xbf16>
    %31 = vector.shape_cast %30 : vector<1x4x384xbf16> to vector<4x384xbf16>
    %c4 = arith.constant 4 : index
    %c0_15 = arith.constant 0 : index
    %32 = vector.load %arg7[%c4, %c0_15] : memref<36x768xbf16, #tpu.memory_space<vmem>>, vector<4x384xbf16>
    tpu.vector_store %arg7[%c4, %c0_15], %31 {strides = array<i32>} : memref<36x768xbf16, #tpu.memory_space<vmem>>, vector<4x384xbf16>,
    %c1_16 = arith.constant 1 : index
    %c0_17 = arith.constant 0 : index
    %c104_18 = arith.constant 104 : index
    %33 = vector.load %arg1[%c1_16, %c0_17, %c104_18] : memref<2x4x640xbf16, #tpu.memory_space<vmem>>, vector<1x4x384xbf16>
    %34 = vector.shape_cast %33 : vector<1x4x384xbf16> to vector<4x384xbf16>
    %c4_19 = arith.constant 4 : index
    %c384_20 = arith.constant 384 : index
    %35 = vector.load %arg7[%c4_19, %c384_20] : memref<36x768xbf16, #tpu.memory_space<vmem>>, vector<4x384xbf16>
    tpu.vector_store %arg7[%c4_19, %c384_20], %34 {strides = array<i32>} : memref<36x768xbf16, #tpu.memory_space<vmem>>, vector<4x384xbf16>,
    %c0_21 = arith.constant 0 : index
    %c0_22 = arith.constant 0 : index
    %c105 = arith.constant 105 : index
    %36 = vector.load %arg1[%c0_21, %c0_22, %c105] : memref<2x4x640xbf16, #tpu.memory_space<vmem>>, vector<1x4x384xbf16>
    %37 = vector.shape_cast %36 : vector<1x4x384xbf16> to vector<4x384xbf16>
    %c8 = arith.constant 8 : index
    %c0_23 = arith.constant 0 : index
    %38 = vector.load %arg7[%c8, %c0_23] : memref<36x768xbf16, #tpu.memory_space<vmem>>, vector<4x384xbf16>
    tpu.vector_store %arg7[%c8, %c0_23], %37 {strides = array<i32>} : memref<36x768xbf16, #tpu.memory_space<vmem>>, vector<4x384xbf16>,
    %c1_24 = arith.constant 1 : index
    %c0_25 = arith.constant 0 : index
    %c105_26 = arith.constant 105 : index
    %39 = vector.load %arg1[%c1_24, %c0_25, %c105_26] : memref<2x4x640xbf16, #tpu.memory_space<vmem>>, vector<1x4x384xbf16>
    %40 = vector.shape_cast %39 : vector<1x4x384xbf16> to vector<4x384xbf16>
    %c8_27 = arith.constant 8 : index
    %c384_28 = arith.constant 384 : index
    %41 = vector.load %arg7[%c8_27, %c384_28] : memref<36x768xbf16, #tpu.memory_space<vmem>>, vector<4x384xbf16>
    tpu.vector_store %arg7[%c8_27, %c384_28], %40 {strides = array<i32>} : memref<36x768xbf16, #tpu.memory_space<vmem>>, vector<4x384xbf16>,
    %c0_29 = arith.constant 0 : index
    %c0_30 = arith.constant 0 : index
    %c127 = arith.constant 127 : index
    %42 = vector.load %arg1[%c0_29, %c0_30, %c127] : memref<2x4x640xbf16, #tpu.memory_space<vmem>>, vector<1x4x384xbf16>
    %43 = vector.shape_cast %42 : vector<1x4x384xbf16> to vector<4x384xbf16>
    %c12 = arith.constant 12 : index
    %c0_31 = arith.constant 0 : index
    %44 = vector.load %arg7[%c12, %c0_31] : memref<36x768xbf16, #tpu.memory_space<vmem>>, vector<4x384xbf16>
    tpu.vector_store %arg7[%c12, %c0_31], %43 {strides = array<i32>} : memref<36x768xbf16, #tpu.memory_space<vmem>>, vector<4x384xbf16>,
    %c1_32 = arith.constant 1 : index
    %c0_33 = arith.constant 0 : index
    %c127_34 = arith.constant 127 : index
    %45 = vector.load %arg1[%c1_32, %c0_33, %c127_34] : memref<2x4x640xbf16, #tpu.memory_space<vmem>>, vector<1x4x384xbf16>
    %46 = vector.shape_cast %45 : vector<1x4x384xbf16> to vector<4x384xbf16>
    %c12_35 = arith.constant 12 : index
    %c384_36 = arith.constant 384 : index
    %47 = vector.load %arg7[%c12_35, %c384_36] : memref<36x768xbf16, #tpu.memory_space<vmem>>, vector<4x384xbf16>
    tpu.vector_store %arg7[%c12_35, %c384_36], %46 {strides = array<i32>} : memref<36x768xbf16, #tpu.memory_space<vmem>>, vector<4x384xbf16>,
    %c0_37 = arith.constant 0 : index
    %c0_38 = arith.constant 0 : index
    %c128 = arith.constant 128 : index
    %48 = vector.load %arg1[%c0_37, %c0_38, %c128] : memref<2x4x640xbf16, #tpu.memory_space<vmem>>, vector<1x4x384xbf16>
    %49 = vector.shape_cast %48 : vector<1x4x384xbf16> to vector<4x384xbf16>
    %c16 = arith.constant 16 : index
    %c0_39 = arith.constant 0 : index
    %50 = vector.load %arg7[%c16, %c0_39] : memref<36x768xbf16, #tpu.memory_space<vmem>>, vector<4x384xbf16>
    tpu.vector_store %arg7[%c16, %c0_39], %49 {strides = array<i32>} : memref<36x768xbf16, #tpu.memory_space<vmem>>, vector<4x384xbf16>,
    %c1_40 = arith.constant 1 : index
    %c0_41 = arith.constant 0 : index
    %c128_42 = arith.constant 128 : index
    %51 = vector.load %arg1[%c1_40, %c0_41, %c128_42] : memref<2x4x640xbf16, #tpu.memory_space<vmem>>, vector<1x4x384xbf16>
    %52 = vector.shape_cast %51 : vector<1x4x384xbf16> to vector<4x384xbf16>
    %c16_43 = arith.constant 16 : index
    %c384_44 = arith.constant 384 : index
    %53 = vector.load %arg7[%c16_43, %c384_44] : memref<36x768xbf16, #tpu.memory_space<vmem>>, vector<4x384xbf16>
    tpu.vector_store %arg7[%c16_43, %c384_44], %52 {strides = array<i32>} : memref<36x768xbf16, #tpu.memory_space<vmem>>, vector<4x384xbf16>,
    %c0_45 = arith.constant 0 : index
    %c0_46 = arith.constant 0 : index
    %c129 = arith.constant 129 : index
    %54 = vector.load %arg1[%c0_45, %c0_46, %c129] : memref<2x4x640xbf16, #tpu.memory_space<vmem>>, vector<1x4x384xbf16>
    %55 = vector.shape_cast %54 : vector<1x4x384xbf16> to vector<4x384xbf16>
    %c20 = arith.constant 20 : index
    %c0_47 = arith.constant 0 : index
    %56 = vector.load %arg7[%c20, %c0_47] : memref<36x768xbf16, #tpu.memory_space<vmem>>, vector<4x384xbf16>
    tpu.vector_store %arg7[%c20, %c0_47], %55 {strides = array<i32>} : memref<36x768xbf16, #tpu.memory_space<vmem>>, vector<4x384xbf16>,
    %c1_48 = arith.constant 1 : index
    %c0_49 = arith.constant 0 : index
    %c129_50 = arith.constant 129 : index
    %57 = vector.load %arg1[%c1_48, %c0_49, %c129_50] : memref<2x4x640xbf16, #tpu.memory_space<vmem>>, vector<1x4x384xbf16>
    %58 = vector.shape_cast %57 : vector<1x4x384xbf16> to vector<4x384xbf16>
    %c20_51 = arith.constant 20 : index
    %c384_52 = arith.constant 384 : index
    %59 = vector.load %arg7[%c20_51, %c384_52] : memref<36x768xbf16, #tpu.memory_space<vmem>>, vector<4x384xbf16>
    tpu.vector_store %arg7[%c20_51, %c384_52], %58 {strides = array<i32>} : memref<36x768xbf16, #tpu.memory_space<vmem>>, vector<4x384xbf16>,
    %c0_53 = arith.constant 0 : index
    %c0_54 = arith.constant 0 : index
    %c151 = arith.constant 151 : index
    %60 = vector.load %arg1[%c0_53, %c0_54, %c151] : memref<2x4x640xbf16, #tpu.memory_space<vmem>>, vector<1x4x384xbf16>
    %61 = vector.shape_cast %60 : vector<1x4x384xbf16> to vector<4x384xbf16>
    %c24 = arith.constant 24 : index
    %c0_55 = arith.constant 0 : index
    %62 = vector.load %arg7[%c24, %c0_55] : memref<36x768xbf16, #tpu.memory_space<vmem>>, vector<4x384xbf16>
    tpu.vector_store %arg7[%c24, %c0_55], %61 {strides = array<i32>} : memref<36x768xbf16, #tpu.memory_space<vmem>>, vector<4x384xbf16>,
    %c1_56 = arith.constant 1 : index
    %c0_57 = arith.constant 0 : index
    %c151_58 = arith.constant 151 : index
    %63 = vector.load %arg1[%c1_56, %c0_57, %c151_58] : memref<2x4x640xbf16, #tpu.memory_space<vmem>>, vector<1x4x384xbf16>
    %64 = vector.shape_cast %63 : vector<1x4x384xbf16> to vector<4x384xbf16>
    %c24_59 = arith.constant 24 : index
    %c384_60 = arith.constant 384 : index
    %65 = vector.load %arg7[%c24_59, %c384_60] : memref<36x768xbf16, #tpu.memory_space<vmem>>, vector<4x384xbf16>
    tpu.vector_store %arg7[%c24_59, %c384_60], %64 {strides = array<i32>} : memref<36x768xbf16, #tpu.memory_space<vmem>>, vector<4x384xbf16>,
    %c0_61 = arith.constant 0 : index
    %c0_62 = arith.constant 0 : index
    %c152 = arith.constant 152 : index
    %66 = vector.load %arg1[%c0_61, %c0_62, %c152] : memref<2x4x640xbf16, #tpu.memory_space<vmem>>, vector<1x4x384xbf16>
    %67 = vector.shape_cast %66 : vector<1x4x384xbf16> to vector<4x384xbf16>
    %c28 = arith.constant 28 : index
    %c0_63 = arith.constant 0 : index
    %68 = vector.load %arg7[%c28, %c0_63] : memref<36x768xbf16, #tpu.memory_space<vmem>>, vector<4x384xbf16>
    tpu.vector_store %arg7[%c28, %c0_63], %67 {strides = array<i32>} : memref<36x768xbf16, #tpu.memory_space<vmem>>, vector<4x384xbf16>,
    %c1_64 = arith.constant 1 : index
    %c0_65 = arith.constant 0 : index
    %c152_66 = arith.constant 152 : index
    %69 = vector.load %arg1[%c1_64, %c0_65, %c152_66] : memref<2x4x640xbf16, #tpu.memory_space<vmem>>, vector<1x4x384xbf16>
    %70 = vector.shape_cast %69 : vector<1x4x384xbf16> to vector<4x384xbf16>
    %c28_67 = arith.constant 28 : index
    %c384_68 = arith.constant 384 : index
    %71 = vector.load %arg7[%c28_67, %c384_68] : memref<36x768xbf16, #tpu.memory_space<vmem>>, vector<4x384xbf16>
    tpu.vector_store %arg7[%c28_67, %c384_68], %70 {strides = array<i32>} : memref<36x768xbf16, #tpu.memory_space<vmem>>, vector<4x384xbf16>,
    %c0_69 = arith.constant 0 : index
    %c0_70 = arith.constant 0 : index
    %c153 = arith.constant 153 : index
    %72 = vector.load %arg1[%c0_69, %c0_70, %c153] : memref<2x4x640xbf16, #tpu.memory_space<vmem>>, vector<1x4x384xbf16>
    %73 = vector.shape_cast %72 : vector<1x4x384xbf16> to vector<4x384xbf16>
    %c32 = arith.constant 32 : index
    %c0_71 = arith.constant 0 : index
    %74 = vector.load %arg7[%c32, %c0_71] : memref<36x768xbf16, #tpu.memory_space<vmem>>, vector<4x384xbf16>
    tpu.vector_store %arg7[%c32, %c0_71], %73 {strides = array<i32>} : memref<36x768xbf16, #tpu.memory_space<vmem>>, vector<4x384xbf16>,
    %c1_72 = arith.constant 1 : index
    %c0_73 = arith.constant 0 : index
    %c153_74 = arith.constant 153 : index
    %75 = vector.load %arg1[%c1_72, %c0_73, %c153_74] : memref<2x4x640xbf16, #tpu.memory_space<vmem>>, vector<1x4x384xbf16>
    %76 = vector.shape_cast %75 : vector<1x4x384xbf16> to vector<4x384xbf16>
    %c32_75 = arith.constant 32 : index
    %c384_76 = arith.constant 384 : index
    %77 = vector.load %arg7[%c32_75, %c384_76] : memref<36x768xbf16, #tpu.memory_space<vmem>>, vector<4x384xbf16>
    tpu.vector_store %arg7[%c32_75, %c384_76], %76 {strides = array<i32>} : memref<36x768xbf16, #tpu.memory_space<vmem>>, vector<4x384xbf16>,
    %c0_77 = arith.constant 0 : index
    %c0_78 = arith.constant 0 : index
    %78 = vector.load %arg2[%c0_77, %c0_78] : memref<16x36xbf16, #tpu.memory_space<vmem>>, vector<16x36xbf16>
    %c0_79 = arith.constant 0 : index
    %c0_80 = arith.constant 0 : index
    %79 = vector.load %arg7[%c0_79, %c0_80] : memref<36x768xbf16, #tpu.memory_space<vmem>>, vector<36x768xbf16>
    %cst_81 = arith.constant dense<0.000000e+00> : vector<16x768xf32>
    %80 = tpu.matmul %78, %79, %cst_81 {dimension_numbers = #tpu.dot_dimension_numbers<[1], [0], [0], [1], [0, 0, 1, 1], [], []>} : vector<16x36xbf16>, vector<36x768xbf16>, vector<16x768xf32> -> vector<16x768xf32>
    %c0_82 = arith.constant 0 : index
    %c0_83 = arith.constant 0 : index
    %81 = vector.load %arg3[%c0_82, %c0_83] : memref<16x1xf32, #tpu.memory_space<vmem>>, vector<16x1xf32>
    %82 = vector.broadcast %81 : vector<16x1xf32> to vector<16x768xf32>
    %83 = arith.addf %80, %82 : vector<16x768xf32>
    %84 = vector.extract_strided_slice %83 {offsets = [0, 0], sizes = [8, 768], strides = [1, 1]} : vector<16x768xf32> to vector<8x768xf32>
    %cst_84 = arith.constant 0.000000e+00 : f32
    %85 = vector.broadcast %cst_84 : f32 to vector<8x768xf32>
    %86 = arith.maximumf %84, %85 : vector<8x768xf32>
    %cst_85 = arith.constant 0.000000e+00 : f32
    %87 = vector.shape_cast %23 : vector<1x768xi1> to vector<1x768xi1>
    %88 = vector.broadcast %87 : vector<1x768xi1> to vector<8x768xi1>
    %89 = vector.broadcast %cst_85 : f32 to vector<8x768xf32>
    %90 = arith.select %88, %86, %89 : vector<8x768xi1>, vector<8x768xf32>
    %91 = arith.truncf %90 : vector<8x768xf32> to vector<8x768xbf16>
    %92 = vector.extract_strided_slice %83 {offsets = [8, 0], sizes = [8, 768], strides = [1, 1]} : vector<16x768xf32> to vector<8x768xf32>
    %93 = vector.extract_strided_slice %91 {offsets = [0, 0], sizes = [8, 384], strides = [1, 1]} : vector<8x768xbf16> to vector<8x384xbf16>
    %c0_86 = arith.constant 0 : index
    %c0_87 = arith.constant 0 : index
    %c128_88 = arith.constant 128 : index
    %94 = vector.load %arg9[%c0_86, %c0_87, %c128_88] : memref<2x8x640xbf16, #tpu.memory_space<vmem>>, vector<1x8x384xbf16>
    %95 = vector.shape_cast %94 : vector<1x8x384xbf16> to vector<8x384xbf16>
    %96 = vector.shape_cast %93 : vector<8x384xbf16> to vector<1x8x384xbf16>
    tpu.vector_store %arg9[%c0_86, %c0_87, %c128_88], %96 {strides = array<i32>} : memref<2x8x640xbf16, #tpu.memory_space<vmem>>, vector<1x8x384xbf16>,
    %97 = vector.extract_strided_slice %91 {offsets = [0, 384], sizes = [8, 384], strides = [1, 1]} : vector<8x768xbf16> to vector<8x384xbf16>
    %c1_89 = arith.constant 1 : index
    %c0_90 = arith.constant 0 : index
    %c128_91 = arith.constant 128 : index
    %98 = vector.load %arg9[%c1_89, %c0_90, %c128_91] : memref<2x8x640xbf16, #tpu.memory_space<vmem>>, vector<1x8x384xbf16>
    %99 = vector.shape_cast %98 : vector<1x8x384xbf16> to vector<8x384xbf16>
    %100 = vector.shape_cast %97 : vector<8x384xbf16> to vector<1x8x384xbf16>
    tpu.vector_store %arg9[%c1_89, %c0_90, %c128_91], %100 {strides = array<i32>} : memref<2x8x640xbf16, #tpu.memory_space<vmem>>, vector<1x8x384xbf16>,
    %c0_92 = arith.constant 0 : index
    %c0_93 = arith.constant 0 : index
    %c103_94 = arith.constant 103 : index
    %101 = vector.load %arg9[%c0_92, %c0_93, %c103_94] : memref<2x8x640xbf16, #tpu.memory_space<vmem>>, vector<1x8x384xbf16>
    %102 = vector.shape_cast %101 : vector<1x8x384xbf16> to vector<8x384xbf16>
    %c0_95 = arith.constant 0 : index
    %c0_96 = arith.constant 0 : index
    %103 = vector.load %arg8[%c0_95, %c0_96] : memref<72x768xbf16, #tpu.memory_space<vmem>>, vector<8x384xbf16>
    tpu.vector_store %arg8[%c0_95, %c0_96], %102 {strides = array<i32>} : memref<72x768xbf16, #tpu.memory_space<vmem>>, vector<8x384xbf16>,
    %c1_97 = arith.constant 1 : index
    %c0_98 = arith.constant 0 : index
    %c103_99 = arith.constant 103 : index
    %104 = vector.load %arg9[%c1_97, %c0_98, %c103_99] : memref<2x8x640xbf16, #tpu.memory_space<vmem>>, vector<1x8x384xbf16>
    %105 = vector.shape_cast %104 : vector<1x8x384xbf16> to vector<8x384xbf16>
    %c0_100 = arith.constant 0 : index
    %c384_101 = arith.constant 384 : index
    %106 = vector.load %arg8[%c0_100, %c384_101] : memref<72x768xbf16, #tpu.memory_space<vmem>>, vector<8x384xbf16>
    tpu.vector_store %arg8[%c0_100, %c384_101], %105 {strides = array<i32>} : memref<72x768xbf16, #tpu.memory_space<vmem>>, vector<8x384xbf16>,
    %c0_102 = arith.constant 0 : index
    %c0_103 = arith.constant 0 : index
    %c104_104 = arith.constant 104 : index
    %107 = vector.load %arg9[%c0_102, %c0_103, %c104_104] : memref<2x8x640xbf16, #tpu.memory_space<vmem>>, vector<1x8x384xbf16>
    %108 = vector.shape_cast %107 : vector<1x8x384xbf16> to vector<8x384xbf16>
    %c8_105 = arith.constant 8 : index
    %c0_106 = arith.constant 0 : index
    %109 = vector.load %arg8[%c8_105, %c0_106] : memref<72x768xbf16, #tpu.memory_space<vmem>>, vector<8x384xbf16>
    tpu.vector_store %arg8[%c8_105, %c0_106], %108 {strides = array<i32>} : memref<72x768xbf16, #tpu.memory_space<vmem>>, vector<8x384xbf16>,
    %c1_107 = arith.constant 1 : index
    %c0_108 = arith.constant 0 : index
    %c104_109 = arith.constant 104 : index
    %110 = vector.load %arg9[%c1_107, %c0_108, %c104_109] : memref<2x8x640xbf16, #tpu.memory_space<vmem>>, vector<1x8x384xbf16>
    %111 = vector.shape_cast %110 : vector<1x8x384xbf16> to vector<8x384xbf16>
    %c8_110 = arith.constant 8 : index
    %c384_111 = arith.constant 384 : index
    %112 = vector.load %arg8[%c8_110, %c384_111] : memref<72x768xbf16, #tpu.memory_space<vmem>>, vector<8x384xbf16>
    tpu.vector_store %arg8[%c8_110, %c384_111], %111 {strides = array<i32>} : memref<72x768xbf16, #tpu.memory_space<vmem>>, vector<8x384xbf16>,
    %c0_112 = arith.constant 0 : index
    %c0_113 = arith.constant 0 : index
    %c105_114 = arith.constant 105 : index
    %113 = vector.load %arg9[%c0_112, %c0_113, %c105_114] : memref<2x8x640xbf16, #tpu.memory_space<vmem>>, vector<1x8x384xbf16>
    %114 = vector.shape_cast %113 : vector<1x8x384xbf16> to vector<8x384xbf16>
    %c16_115 = arith.constant 16 : index
    %c0_116 = arith.constant 0 : index
    %115 = vector.load %arg8[%c16_115, %c0_116] : memref<72x768xbf16, #tpu.memory_space<vmem>>, vector<8x384xbf16>
    tpu.vector_store %arg8[%c16_115, %c0_116], %114 {strides = array<i32>} : memref<72x768xbf16, #tpu.memory_space<vmem>>, vector<8x384xbf16>,
    %c1_117 = arith.constant 1 : index
    %c0_118 = arith.constant 0 : index
    %c105_119 = arith.constant 105 : index
    %116 = vector.load %arg9[%c1_117, %c0_118, %c105_119] : memref<2x8x640xbf16, #tpu.memory_space<vmem>>, vector<1x8x384xbf16>
    %117 = vector.shape_cast %116 : vector<1x8x384xbf16> to vector<8x384xbf16>
    %c16_120 = arith.constant 16 : index
    %c384_121 = arith.constant 384 : index
    %118 = vector.load %arg8[%c16_120, %c384_121] : memref<72x768xbf16, #tpu.memory_space<vmem>>, vector<8x384xbf16>
    tpu.vector_store %arg8[%c16_120, %c384_121], %117 {strides = array<i32>} : memref<72x768xbf16, #tpu.memory_space<vmem>>, vector<8x384xbf16>,
    %c0_122 = arith.constant 0 : index
    %c0_123 = arith.constant 0 : index
    %c127_124 = arith.constant 127 : index
    %119 = vector.load %arg9[%c0_122, %c0_123, %c127_124] : memref<2x8x640xbf16, #tpu.memory_space<vmem>>, vector<1x8x384xbf16>
    %120 = vector.shape_cast %119 : vector<1x8x384xbf16> to vector<8x384xbf16>
    %c24_125 = arith.constant 24 : index
    %c0_126 = arith.constant 0 : index
    %121 = vector.load %arg8[%c24_125, %c0_126] : memref<72x768xbf16, #tpu.memory_space<vmem>>, vector<8x384xbf16>
    tpu.vector_store %arg8[%c24_125, %c0_126], %120 {strides = array<i32>} : memref<72x768xbf16, #tpu.memory_space<vmem>>, vector<8x384xbf16>,
    %c1_127 = arith.constant 1 : index
    %c0_128 = arith.constant 0 : index
    %c127_129 = arith.constant 127 : index
    %122 = vector.load %arg9[%c1_127, %c0_128, %c127_129] : memref<2x8x640xbf16, #tpu.memory_space<vmem>>, vector<1x8x384xbf16>
    %123 = vector.shape_cast %122 : vector<1x8x384xbf16> to vector<8x384xbf16>
    %c24_130 = arith.constant 24 : index
    %c384_131 = arith.constant 384 : index
    %124 = vector.load %arg8[%c24_130, %c384_131] : memref<72x768xbf16, #tpu.memory_space<vmem>>, vector<8x384xbf16>
    tpu.vector_store %arg8[%c24_130, %c384_131], %123 {strides = array<i32>} : memref<72x768xbf16, #tpu.memory_space<vmem>>, vector<8x384xbf16>,
    %c0_132 = arith.constant 0 : index
    %c0_133 = arith.constant 0 : index
    %c128_134 = arith.constant 128 : index
    %125 = vector.load %arg9[%c0_132, %c0_133, %c128_134] : memref<2x8x640xbf16, #tpu.memory_space<vmem>>, vector<1x8x384xbf16>
    %126 = vector.shape_cast %125 : vector<1x8x384xbf16> to vector<8x384xbf16>
    %c32_135 = arith.constant 32 : index
    %c0_136 = arith.constant 0 : index
    %127 = vector.load %arg8[%c32_135, %c0_136] : memref<72x768xbf16, #tpu.memory_space<vmem>>, vector<8x384xbf16>
    tpu.vector_store %arg8[%c32_135, %c0_136], %126 {strides = array<i32>} : memref<72x768xbf16, #tpu.memory_space<vmem>>, vector<8x384xbf16>,
    %c1_137 = arith.constant 1 : index
    %c0_138 = arith.constant 0 : index
    %c128_139 = arith.constant 128 : index
    %128 = vector.load %arg9[%c1_137, %c0_138, %c128_139] : memref<2x8x640xbf16, #tpu.memory_space<vmem>>, vector<1x8x384xbf16>
    %129 = vector.shape_cast %128 : vector<1x8x384xbf16> to vector<8x384xbf16>
    %c32_140 = arith.constant 32 : index
    %c384_141 = arith.constant 384 : index
    %130 = vector.load %arg8[%c32_140, %c384_141] : memref<72x768xbf16, #tpu.memory_space<vmem>>, vector<8x384xbf16>
    tpu.vector_store %arg8[%c32_140, %c384_141], %129 {strides = array<i32>} : memref<72x768xbf16, #tpu.memory_space<vmem>>, vector<8x384xbf16>,
    %c0_142 = arith.constant 0 : index
    %c0_143 = arith.constant 0 : index
    %c129_144 = arith.constant 129 : index
    %131 = vector.load %arg9[%c0_142, %c0_143, %c129_144] : memref<2x8x640xbf16, #tpu.memory_space<vmem>>, vector<1x8x384xbf16>
    %132 = vector.shape_cast %131 : vector<1x8x384xbf16> to vector<8x384xbf16>
    %c40 = arith.constant 40 : index
    %c0_145 = arith.constant 0 : index
    %133 = vector.load %arg8[%c40, %c0_145] : memref<72x768xbf16, #tpu.memory_space<vmem>>, vector<8x384xbf16>
    tpu.vector_store %arg8[%c40, %c0_145], %132 {strides = array<i32>} : memref<72x768xbf16, #tpu.memory_space<vmem>>, vector<8x384xbf16>,
    %c1_146 = arith.constant 1 : index
    %c0_147 = arith.constant 0 : index
    %c129_148 = arith.constant 129 : index
    %134 = vector.load %arg9[%c1_146, %c0_147, %c129_148] : memref<2x8x640xbf16, #tpu.memory_space<vmem>>, vector<1x8x384xbf16>
    %135 = vector.shape_cast %134 : vector<1x8x384xbf16> to vector<8x384xbf16>
    %c40_149 = arith.constant 40 : index
    %c384_150 = arith.constant 384 : index
    %136 = vector.load %arg8[%c40_149, %c384_150] : memref<72x768xbf16, #tpu.memory_space<vmem>>, vector<8x384xbf16>
    tpu.vector_store %arg8[%c40_149, %c384_150], %135 {strides = array<i32>} : memref<72x768xbf16, #tpu.memory_space<vmem>>, vector<8x384xbf16>,
    %c0_151 = arith.constant 0 : index
    %c0_152 = arith.constant 0 : index
    %c151_153 = arith.constant 151 : index
    %137 = vector.load %arg9[%c0_151, %c0_152, %c151_153] : memref<2x8x640xbf16, #tpu.memory_space<vmem>>, vector<1x8x384xbf16>
    %138 = vector.shape_cast %137 : vector<1x8x384xbf16> to vector<8x384xbf16>
    %c48 = arith.constant 48 : index
    %c0_154 = arith.constant 0 : index
    %139 = vector.load %arg8[%c48, %c0_154] : memref<72x768xbf16, #tpu.memory_space<vmem>>, vector<8x384xbf16>
    tpu.vector_store %arg8[%c48, %c0_154], %138 {strides = array<i32>} : memref<72x768xbf16, #tpu.memory_space<vmem>>, vector<8x384xbf16>,
    %c1_155 = arith.constant 1 : index
    %c0_156 = arith.constant 0 : index
    %c151_157 = arith.constant 151 : index
    %140 = vector.load %arg9[%c1_155, %c0_156, %c151_157] : memref<2x8x640xbf16, #tpu.memory_space<vmem>>, vector<1x8x384xbf16>
    %141 = vector.shape_cast %140 : vector<1x8x384xbf16> to vector<8x384xbf16>
    %c48_158 = arith.constant 48 : index
    %c384_159 = arith.constant 384 : index
    %142 = vector.load %arg8[%c48_158, %c384_159] : memref<72x768xbf16, #tpu.memory_space<vmem>>, vector<8x384xbf16>
    tpu.vector_store %arg8[%c48_158, %c384_159], %141 {strides = array<i32>} : memref<72x768xbf16, #tpu.memory_space<vmem>>, vector<8x384xbf16>,
    %c0_160 = arith.constant 0 : index
    %c0_161 = arith.constant 0 : index
    %c152_162 = arith.constant 152 : index
    %143 = vector.load %arg9[%c0_160, %c0_161, %c152_162] : memref<2x8x640xbf16, #tpu.memory_space<vmem>>, vector<1x8x384xbf16>
    %144 = vector.shape_cast %143 : vector<1x8x384xbf16> to vector<8x384xbf16>
    %c56 = arith.constant 56 : index
    %c0_163 = arith.constant 0 : index
    %145 = vector.load %arg8[%c56, %c0_163] : memref<72x768xbf16, #tpu.memory_space<vmem>>, vector<8x384xbf16>
    tpu.vector_store %arg8[%c56, %c0_163], %144 {strides = array<i32>} : memref<72x768xbf16, #tpu.memory_space<vmem>>, vector<8x384xbf16>,
    %c1_164 = arith.constant 1 : index
    %c0_165 = arith.constant 0 : index
    %c152_166 = arith.constant 152 : index
    %146 = vector.load %arg9[%c1_164, %c0_165, %c152_166] : memref<2x8x640xbf16, #tpu.memory_space<vmem>>, vector<1x8x384xbf16>
    %147 = vector.shape_cast %146 : vector<1x8x384xbf16> to vector<8x384xbf16>
    %c56_167 = arith.constant 56 : index
    %c384_168 = arith.constant 384 : index
    %148 = vector.load %arg8[%c56_167, %c384_168] : memref<72x768xbf16, #tpu.memory_space<vmem>>, vector<8x384xbf16>
    tpu.vector_store %arg8[%c56_167, %c384_168], %147 {strides = array<i32>} : memref<72x768xbf16, #tpu.memory_space<vmem>>, vector<8x384xbf16>,
    %c0_169 = arith.constant 0 : index
    %c0_170 = arith.constant 0 : index
    %c153_171 = arith.constant 153 : index
    %149 = vector.load %arg9[%c0_169, %c0_170, %c153_171] : memref<2x8x640xbf16, #tpu.memory_space<vmem>>, vector<1x8x384xbf16>
    %150 = vector.shape_cast %149 : vector<1x8x384xbf16> to vector<8x384xbf16>
    %c64 = arith.constant 64 : index
    %c0_172 = arith.constant 0 : index
    %151 = vector.load %arg8[%c64, %c0_172] : memref<72x768xbf16, #tpu.memory_space<vmem>>, vector<8x384xbf16>
    tpu.vector_store %arg8[%c64, %c0_172], %150 {strides = array<i32>} : memref<72x768xbf16, #tpu.memory_space<vmem>>, vector<8x384xbf16>,
    %c1_173 = arith.constant 1 : index
    %c0_174 = arith.constant 0 : index
    %c153_175 = arith.constant 153 : index
    %152 = vector.load %arg9[%c1_173, %c0_174, %c153_175] : memref<2x8x640xbf16, #tpu.memory_space<vmem>>, vector<1x8x384xbf16>
    %153 = vector.shape_cast %152 : vector<1x8x384xbf16> to vector<8x384xbf16>
    %c64_176 = arith.constant 64 : index
    %c384_177 = arith.constant 384 : index
    %154 = vector.load %arg8[%c64_176, %c384_177] : memref<72x768xbf16, #tpu.memory_space<vmem>>, vector<8x384xbf16>
    tpu.vector_store %arg8[%c64_176, %c384_177], %153 {strides = array<i32>} : memref<72x768xbf16, #tpu.memory_space<vmem>>, vector<8x384xbf16>,
    %c0_178 = arith.constant 0 : index
    %c0_179 = arith.constant 0 : index
    %155 = vector.load %arg4[%c0_178, %c0_179] : memref<8x72xbf16, #tpu.memory_space<vmem>>, vector<8x72xbf16>
    %c0_180 = arith.constant 0 : index
    %c0_181 = arith.constant 0 : index
    %156 = vector.load %arg8[%c0_180, %c0_181] : memref<72x768xbf16, #tpu.memory_space<vmem>>, vector<72x768xbf16>
    %cst_182 = arith.constant dense<0.000000e+00> : vector<8x768xf32>
    %157 = tpu.matmul %155, %156, %cst_182 {dimension_numbers = #tpu.dot_dimension_numbers<[1], [0], [0], [1], [0, 0, 1, 1], [], []>} : vector<8x72xbf16>, vector<72x768xbf16>, vector<8x768xf32> -> vector<8x768xf32>
    %c0_183 = arith.constant 0 : index
    %c0_184 = arith.constant 0 : index
    %158 = vector.load %arg5[%c0_183, %c0_184] : memref<8x1xf32, #tpu.memory_space<vmem>>, vector<8x1xf32>
    %159 = vector.broadcast %158 : vector<8x1xf32> to vector<8x768xf32>
    %160 = arith.addf %157, %159 : vector<8x768xf32>
    %cst_185 = arith.constant 0.000000e+00 : f32
    %161 = vector.broadcast %cst_185 : f32 to vector<8x768xf32>
    %162 = arith.maximumf %160, %161 : vector<8x768xf32>
    %163 = arith.addf %162, %92 : vector<8x768xf32>
    %cst_186 = arith.constant 0.000000e+00 : f32
    %164 = vector.broadcast %cst_186 : f32 to vector<8x768xf32>
    %165 = arith.maximumf %163, %164 : vector<8x768xf32>
    %166 = vector.extract_strided_slice %165 {offsets = [0, 0], sizes = [8, 384], strides = [1, 1]} : vector<8x768xf32> to vector<8x384xf32>
    %c0_187 = arith.constant 0 : index
    %c0_188 = arith.constant 0 : index
    %c0_189 = arith.constant 0 : index
    %167 = vector.load %arg6[%c0_187, %c0_188, %c0_189] : memref<2x8x384xf32, #tpu.memory_space<vmem>>, vector<1x8x384xf32>
    %168 = vector.shape_cast %167 : vector<1x8x384xf32> to vector<8x384xf32>
    %169 = vector.shape_cast %166 : vector<8x384xf32> to vector<1x8x384xf32>
    tpu.vector_store %arg6[%c0_187, %c0_188, %c0_189], %169 {strides = array<i32>} : memref<2x8x384xf32, #tpu.memory_space<vmem>>, vector<1x8x384xf32>,
    %170 = vector.extract_strided_slice %165 {offsets = [0, 384], sizes = [8, 384], strides = [1, 1]} : vector<8x768xf32> to vector<8x384xf32>
    %c1_190 = arith.constant 1 : index
    %c0_191 = arith.constant 0 : index
    %c0_192 = arith.constant 0 : index
    %171 = vector.load %arg6[%c1_190, %c0_191, %c0_192] : memref<2x8x384xf32, #tpu.memory_space<vmem>>, vector<1x8x384xf32>
    %172 = vector.shape_cast %171 : vector<1x8x384xf32> to vector<8x384xf32>
    %173 = vector.shape_cast %170 : vector<8x384xf32> to vector<1x8x384xf32>
    tpu.vector_store %arg6[%c1_190, %c0_191, %c0_192], %173 {strides = array<i32>} : memref<2x8x384xf32, #tpu.memory_space<vmem>>, vector<1x8x384xf32>,
    return
  }
  func.func @transform_0(%arg0: i32) -> (i32, i32, i32) {
    %c0_i32 = arith.constant 0 : i32
    %c0_i32_0 = arith.constant 0 : i32
    %c0_i32_1 = arith.constant 0 : i32
    return %arg0, %c0_i32, %c0_i32_0 : i32, i32, i32
  }
  func.func @transform_1(%arg0: i32) -> (i32, i32) {
    %c0_i32 = arith.constant 0 : i32
    %c0_i32_0 = arith.constant 0 : i32
    %c0_i32_1 = arith.constant 0 : i32
    return %c0_i32, %c0_i32_0 : i32, i32
  }
  func.func @transform_2(%arg0: i32) -> (i32, i32) {
    %c0_i32 = arith.constant 0 : i32
    %c0_i32_0 = arith.constant 0 : i32
    %c0_i32_1 = arith.constant 0 : i32
    return %c0_i32, %c0_i32_0 : i32, i32
  }
  func.func @transform_3(%arg0: i32) -> (i32, i32) {
    %c0_i32 = arith.constant 0 : i32
    %c0_i32_0 = arith.constant 0 : i32
    %c0_i32_1 = arith.constant 0 : i32
    return %c0_i32, %c0_i32_0 : i32, i32
  }
  func.func @transform_4(%arg0: i32) -> (i32, i32) {
    %c0_i32 = arith.constant 0 : i32
    %c0_i32_0 = arith.constant 0 : i32
    %c0_i32_1 = arith.constant 0 : i32
    return %c0_i32, %c0_i32_0 : i32, i32
  }
  func.func @transform_5(%arg0: i32) -> (i32, i32, i32) {
    %c0_i32 = arith.constant 0 : i32
    %c0_i32_0 = arith.constant 0 : i32
    %c0_i32_1 = arith.constant 0 : i32
    return %arg0, %c0_i32, %c0_i32_0 : i32, i32, i32
  }
}

</mosaic_0001>

<bundles_post_ra>
// kernel: tpu_custom_call.1
= control target key start
LH: loop header
LB: loop body
LE: loop exit
PB: predicated region body
PF: predicated region fallthrough
CT: control target
= control target key end

     0   :  { %10 = vsyncpa [#allocation6], 0  ;;  %s2206_s0 = inlined_call_operand.vmem [shape: bf16[2,4,640], index: 0, kind: input, shape index: {}]   ;;  %s2207_s1 = inlined_call_operand.hbm [shape: bf16[16,36], index: 1, kind: input, shape index: {}]   ;;  %s2208_s2 = inlined_call_operand.vmem [shape: f32[16,1], index: 2, kind: input, shape index: {}]   ;;  %s2209_s3 = inlined_call_operand.vmem [shape: bf16[8,72], index: 3, kind: input, shape index: {}]   ;;  %s2210_s4 = inlined_call_operand.vmem [shape: f32[8,1], index: 4, kind: input, shape index: {}]   ;;  %s2211_s5 = inlined_call_operand.hbm [shape: f32[2,8,384], index: 5, kind: output, shape index: {}]  }
   0x1   :  { %11 = vsyncpa [#allocation7], 0  ;;  %s1864_s18 = smov [#allocation5]  }
   0x2   :  { %s19_s19 = sshll.u32 %s1864_s18, 4  ;;  %s20_s19 = int_to_ptr.vmem [resolvable:$true] %s19_s19 }
   0x3   :  { %s1828_s20 = scalar_lea.vmem %s20_s19, 128  ;;  %p1833_p1 = scmp.lt.s32.totalorder %s20_s19, %s20_s19 }
   0x4   :  { %p1829_p0 = scmp.ne.s32.totalorder %s20_s19, %s1828_s20  ;;  %p1834_p2 = scmp.lt.s32.totalorder %s1828_s20, %s1828_s20 }
   0x6   :  { %p1835_p3 = por %p1834_p2, %p1833_p1 }
   0x8   :  { %p1836_p4 = pnand %p1835_p3, %p1829_p0 }
   0xa   :  { %1839 = shalt.err (!%p1836_p4)
}
   0xb   :  { %s1865_s21 = smov 64   ;;  %s1866_s22 = smov 4  }
   0xc   :  { %25 = dma.hbm_to_vmem [thread:$0]  %s2207_s1, 128, %s20_s19, [#allocation6], %s1865_s21, %s1865_s21, %s1866_s22  }
   0xd   :  { %1860 = dma.done.wait [#allocation6], 128  }
   0xe   :  { %1861 = vsyncadd [#allocation6], 4294967168  ;;  %v42_v0 = vlaneseq  ;;  %v1867_v1 = vmov 1983009808   ;;  %v1660_v6 = vld [vmem:[%s2206_s0 + $0xc] sm:$0xff]  ;;  %v634_v7 = vld [vmem:[%s2206_s0 + $0x2] sm:$0xff] }
   0xf   :  { %v167_v2 = vunpack.c.l.s4 %v1867_v1  ;;  %s1868_s1 = smov 103   ;;  %v667_v10 = vcombine.high %v1660_v6, %v1660_v6  ;;  %v636_v11 = vcombine.high %v634_v7, %v634_v7  ;;  %v409_v12 = vld [vmem:[%s2206_s0 + $0x2] sm:$0x3f]  ;;  %s1869_s6 = smov 105   ;;  %v453_v15 = vcombine.low %v634_v7, %v634_v7  ;;  %v1654_v17 = vld [vmem:[%s2206_s0 + $0xc] sm:$0x3f] }
  0x10   :  { %v170_v3 = vshrl.u32 %v42_v0, 7  ;;  %s1870_s7 = smov 127   ;;  %1652 = vst.sshfl [vmem:[#allocation2 + $0x30] sm:$0xf pattern:$0x76325410] %v409_v12  ;;  %v411_v18 = vcombine.high %v409_v12, %v409_v12  ;;  %v432_v19 = vcombine.high %v1654_v17, %v1654_v17  ;;  %v484_v20 = vcombine.low %v1660_v6, %v1660_v6 }
  0x11   :  { %v168_v4 = vunpack.c.0.s8 %v167_v2  ;;  %1655 = vst.sshfl [vmem:[#allocation2 + $0x3c] sm:$0xf pattern:$0x76325410] %v1654_v17  ;;  %s1871_s10 = smov 104   ;;  %v163_v22 = vld [vmem:[%s2206_s0] sm:$0xff] }
  0x12   :  { %1653 = vst.sshfl [vmem:[#allocation2 + $0x38] sm:$0x3 pattern:$0x76325410] %v411_v18  ;;  %v165_v23 = vcombine.high %v163_v22, %v163_v22  ;;  %v228_v26 = vcombine.low %v163_v22, %v163_v22  ;;  %s1872_s13 = smov 25   ;;  %s1873_s14 = smov 24  }
  0x13   :  { %v1913_v5 = vsub.s32 %v168_v4, %v170_v3  ;;  %1656 = vst.sshfl [vmem:[#allocation2 + $0x44] sm:$0x3 pattern:$0x76325410] %v432_v19  ;;  %v1648_v28 = vld [vmem:[%s2206_s0 + $0xa] sm:$0xff]  ;;  %s1874_s17 = smov 23  }
  0x14   :  { %v198_v29 = vcombine.high %v1648_v28, %v1648_v28  ;;  %s1875_s18 = smov 1   ;;  %v259_v32 = vcombine.low %v1648_v28, %v1648_v28  ;;  %v1876_v34 = vmov 0   ;;  %v712_v35 = vld [vmem:[%s2208_s2] sm:$0xff]  ;;  %vm2216_vm0 = vcmask 1039360  }
  0x15   :  { %v674_v8 = vrot.slane %v1660_v6, %v1913_v5  ;;  %v643_v9 = vrot.slane %v634_v7, %v1913_v5  ;;  %v650_v13 = vrot.slane %v636_v11, %v1913_v5  ;;  %v681_v14 = vrot.slane %v667_v10, %v1913_v5  ;;  %36 = vst [vmem:[#allocation4] sm:$0xff] %v1876_v34 }
  0x16   :  { %v460_v16 = vrot.slane %v453_v15, %v1913_v5  ;;  %v491_v21 = vrot.slane %v484_v20, %v1913_v5  ;;  %v172_v24 = vrot.slane %v163_v22, %v1913_v5  ;;  %v179_v25 = vrot.slane %v165_v23, %v1913_v5  ;;  %37 = vst [vmem:[#allocation4 + $0x8] sm:$0xff] %v1876_v34 }
  0x17   :  { %682 = vrot.lane.b32.xlu1 %v674_v8, %s1868_s1  ;;  %651 = vrot.lane.b32.xlu0 %v643_v9, %s1868_s1  ;;  %v235_v27 = vrot.slane %v228_v26, %v1913_v5  ;;  %v205_v30 = vrot.slane %v1648_v28, %v1913_v5  ;;  %v212_v31 = vrot.slane %v198_v29, %v1913_v5  ;;  %vm186_vm1 = vcmask 1043456  }
  0x18   :  { %v266_v33 = vrot.slane %v259_v32, %v1913_v5  ;;  %38 = vst [vmem:[#allocation4 + $0x10] sm:$0xf] %v1876_v34  ;;  %39 = vst [vmem:[#allocation4 + $0x14] sm:$0xff] %v1876_v34  ;;  %859 = vmatprep.mubr.bf16.mxu0 %v1876_v34  ;;  %902 = vmatprep.mubr.bf16.mxu1 %v1876_v34  ;;  %vm658_vm2 = vcmask 842752   ;;  %vm536_vm3 = vcmask 859136   ;;  %vm597_vm4 = vcmask 850944  }
  0x19   :  { %40 = vst [vmem:[#allocation4 + $0x1c] sm:$0xff] %v1876_v34  ;;  %41 = vst [vmem:[#allocation4 + $0x24] sm:$0xf] %v1876_v34  ;;  %1757 = vset.pattern.permute.xlu0 %v1876_v34  ;;  %1758 = vset.pattern.permute.xlu1 %v1876_v34  ;;  %vm808_vm5 = vcmask 1041408   ;;  %vm2213_vm6 = vcmask 203776   ;;  %vm2212_vm7 = vcmask 195584  }
  0x1a   :  { %vm2215_vm8 = vcmask 187392   ;;  %vm2214_vm9 = vcmask 7168   ;;  %vm804_vm10 = vcmask 293888  }
  0x1b   :  { %529 = vrot.lane.b32.xlu0 %v643_v9, %s1869_s6  ;;  %470 = vrot.lane.b32.xlu1 %v643_v9, %s1870_s7 }
  0x1f   :  { %653 = vrot.lane.b32.xlu0 %v650_v13, %s1868_s1  ;;  %684 = vrot.lane.b32.xlu1 %v681_v14, %s1868_s1 }
  0x23   :  { %531 = vrot.lane.b32.xlu1 %v650_v13, %s1869_s6  ;;  %468 = vrot.lane.b32.xlu0 %v460_v16, %s1870_s7 }
  0x27   :  { %592 = vrot.lane.b32.xlu1 %v643_v9, %s1871_s10  ;;  %590 = vrot.lane.b32.xlu0 %v460_v16, %s1871_s10 }
  0x2b   :  { %501 = vrot.lane.b32.xlu1 %v674_v8, %s1870_s7  ;;  %499 = vrot.lane.b32.xlu0 %v491_v21, %s1870_s7 }
  0x2f   :  { %562 = vrot.lane.b32.xlu1 %v681_v14, %s1869_s6  ;;  %560 = vrot.lane.b32.xlu0 %v674_v8, %s1869_s6 }
  0x33   :  { %623 = vrot.lane.b32.xlu1 %v674_v8, %s1871_s10  ;;  %621 = vrot.lane.b32.xlu0 %v491_v21, %s1871_s10 }
  0x37   :  { %180 = vrot.lane.b32.xlu0 %v172_v24, %s1872_s13  ;;  %182 = vrot.lane.b32.xlu1 %v179_v25, %s1872_s13 }
  0x3b   :  { %243 = vrot.lane.b32.xlu0 %v235_v27, %s1873_s14  ;;  %245 = vrot.lane.b32.xlu1 %v172_v24, %s1873_s14 }
  0x3f   :  { %304 = vrot.lane.b32.xlu0 %v172_v24, %s1874_s17  ;;  %306 = vrot.lane.b32.xlu1 %v179_v25, %s1874_s17 }
  0x43   :  { %365 = vrot.lane.b32.xlu0 %v235_v27, %s1875_s18  ;;  %367 = vrot.lane.b32.xlu1 %v172_v24, %s1875_s18 }
  0x47   :  { %213 = vrot.lane.b32.xlu0 %v205_v30, %s1872_s13  ;;  %215 = vrot.lane.b32.xlu1 %v212_v31, %s1872_s13 }
  0x4b   :  { %274 = vrot.lane.b32.xlu0 %v266_v33, %s1873_s14  ;;  %276 = vrot.lane.b32.xlu1 %v205_v30, %s1873_s14 }
  0x4f   :  { %335 = vrot.lane.b32.xlu0 %v205_v30, %s1874_s17  ;;  %337 = vrot.lane.b32.xlu1 %v212_v31, %s1874_s17 }
  0x53   :  { %396 = vrot.lane.b32.xlu0 %v266_v33, %s1875_s18  ;;  %398 = vrot.lane.b32.xlu1 %v205_v30, %s1875_s18 }
  0x57   :  { %716 = vperm.xlu0 %1757, %v712_v35  }
  0x89   :  { %v683_v36 = vpop.permute.xlu1 %682  ;;  %v652_v37 = vpop.permute.xlu0 %651 }
  0x8a   :  { %v686_v44 = vrot.slane %v683_v36, 4  ;;  %v655_v45 = vrot.slane %v652_v37, 4 }
  0x8d   :  { %v530_v38 = vpop.permute.xlu0 %529  ;;  %v471_v39 = vpop.permute.xlu1 %470 }
  0x8e   :  { %v473_v40 = vrot.slane %v471_v39, 4  ;;  %v533_v56 = vrot.slane %v530_v38, 4 }
  0x90   :  { %v477_v41 = vsel %vm2216_vm0, %v471_v39, %v473_v40 }
  0x91   :  { %481 = vst [vmem:[#allocation2 + $0x38] sm:$0xc] %v477_v41  ;;  %v654_v42 = vpop.permute.xlu0 %653  ;;  %v685_v43 = vpop.permute.xlu1 %684 }
  0x92   :  { %v656_v46 = vrot.slane %v654_v42, 4  ;;  %v687_v47 = vrot.slane %v685_v43, 4 }
  0x94   :  { %v657_v48 = vsel %vm186_vm1, %v655_v45, %v656_v46  ;;  %v660_v49 = vsel %vm658_vm2, %v654_v42, %v656_v46  ;;  %v688_v50 = vsel %vm186_vm1, %v686_v44, %v687_v47  ;;  %v690_v51 = vsel %vm658_vm2, %v685_v43, %v687_v47 }
  0x95   :  { %v659_v52 = vsel %vm658_vm2, %v652_v37, %v657_v48  ;;  %664 = vst [vmem:[#allocation2 + $0x68] sm:$0x3] %v660_v49  ;;  %v689_v53 = vsel %vm658_vm2, %v683_v36, %v688_v50  ;;  %694 = vst [vmem:[#allocation2 + $0x74] sm:$0x3] %v690_v51  ;;  %v532_v54 = vpop.permute.xlu1 %531  ;;  %v469_v55 = vpop.permute.xlu0 %468 }
  0x96   :  { %663 = vst [vmem:[#allocation2 + $0x60] sm:$0x33] %v659_v52  ;;  %693 = vst [vmem:[#allocation2 + $0x6c] sm:$0x33] %v689_v53  ;;  %v534_v57 = vrot.slane %v532_v54, 4  ;;  %v472_v58 = vrot.slane %v469_v55, 4 }
  0x98   :  { %v535_v59 = vsel %vm186_vm1, %v533_v56, %v534_v57  ;;  %v538_v60 = vsel %vm536_vm3, %v532_v54, %v534_v57  ;;  %v474_v61 = vsel %vm186_vm1, %v472_v58, %v473_v40 }
  0x99   :  { %v537_v62 = vsel %vm536_vm3, %v530_v38, %v535_v59  ;;  %542 = vst [vmem:[#allocation2 + $0x50] sm:$0x3] %v538_v60  ;;  %v476_v63 = vsel %vm2216_vm0, %v469_v55, %v474_v61  ;;  %v593_v1 = vpop.permute.xlu1 %592  ;;  %v591_v2 = vpop.permute.xlu0 %590 }
  0x9a   :  { %541 = vst [vmem:[#allocation2 + $0x48] sm:$0x33] %v537_v62  ;;  %480 = vst [vmem:[#allocation2 + $0x30] sm:$0xcc] %v476_v63  ;;  %v595_v3 = vrot.slane %v593_v1, 4  ;;  %v594_v4 = vrot.slane %v591_v2, 4 }
  0x9c   :  { %v599_v5 = vsel %vm597_vm4, %v593_v1, %v595_v3  ;;  %v596_v6 = vsel %vm186_vm1, %v594_v4, %v595_v3 }
  0x9d   :  { %603 = vst [vmem:[#allocation2 + $0x50] sm:$0xc] %v599_v5  ;;  %v598_v7 = vsel %vm597_vm4, %v591_v2, %v596_v6  ;;  %v502_v8 = vpop.permute.xlu1 %501  ;;  %v500_v9 = vpop.permute.xlu0 %499  ;;  %v709_v10 = vld [vmem:[#allocation2 + $0x60] sm:$0x33]  ;;  %v710_v11 = vld [vmem:[#allocation2 + $0x68] sm:$0x33] }
  0x9e   :  { %602 = vst [vmem:[#allocation2 + $0x48] sm:$0xcc] %v598_v7  ;;  %v504_v12 = vrot.slane %v502_v8, 4  ;;  %v503_v13 = vrot.slane %v500_v9, 4  ;;  %v1675_v14 = vcombine.high %v709_v10, %v709_v10  ;;  %v1677_v15 = vcombine.high %v710_v11, %v710_v11 }
  0x9f   :  { %v1674_v16 = vcombine.low %v709_v10, %v709_v10  ;;  %v1676_v17 = vcombine.low %v710_v11, %v710_v11 }
  0xa0   :  { %v507_v18 = vsel %vm2216_vm0, %v502_v8, %v504_v12  ;;  %v505_v19 = vsel %vm186_vm1, %v503_v13, %v504_v12  ;;  %1680 = vmatprep.subr.msk.bf16.mxu0 %vm808_vm5, %v1675_v14  ;;  %1682 = vmatprep.subr.msk.bf16.mxu1 %vm808_vm5, %v1677_v15 }
  0xa1   :  { %511 = vst [vmem:[#allocation2 + $0x44] sm:$0xc] %v507_v18  ;;  %v506_v20 = vsel %vm2216_vm0, %v500_v9, %v505_v19  ;;  %v810_v21 = vsel %vm808_vm5, %v1674_v16, 0  ;;  %v816_v22 = vsel %vm808_vm5, %v1676_v17, 0  ;;  %v563_v23 = vpop.permute.xlu1 %562  ;;  %v561_v24 = vpop.permute.xlu0 %560 }
  0xa2   :  { %510 = vst [vmem:[#allocation2 + $0x3c] sm:$0xcc] %v506_v20  ;;  %838 = vmatpush1.bf16.msra.mxu0 %v810_v21  ;;  %881 = vmatpush1.bf16.msra.mxu1 %v816_v22  ;;  %v565_v25 = vrot.slane %v563_v23, 4  ;;  %v564_v26 = vrot.slane %v561_v24, 4  ;;  %v711_v20 = vld [vmem:[#allocation2 + $0x70] sm:$0x33] }
  0xa4   :  { %v568_v27 = vsel %vm536_vm3, %v563_v23, %v565_v25  ;;  %v566_v28 = vsel %vm186_vm1, %v564_v26, %v565_v25  ;;  %v1776_v57 = vld [vmem:[#allocation2 + $0x38] ss:$24 sps:$4 sm:$0xff]  }
  0xa5   :  { %572 = vst [vmem:[#allocation2 + $0x5c] sm:$0x3] %v568_v27  ;;  %v567_v29 = vsel %vm536_vm3, %v561_v24, %v566_v28  ;;  %v624_v30 = vpop.permute.xlu1 %623  ;;  %v622_v31 = vpop.permute.xlu0 %621  ;;  %v1771_v32 = vld [vmem:[#allocation2 + $0x34] ss:$24 sps:$4 sm:$0xff]   ;;  %v1773_v33 = vld [vmem:[#allocation2 + $0x30] ss:$24 sps:$4 sm:$0xff]   ;;  %v1679_v28 = vcombine.high %v711_v20, %v711_v20 }
  0xa6   :  { %571 = vst [vmem:[#allocation2 + $0x54] sm:$0x33] %v567_v29  ;;  %v626_v35 = vrot.slane %v624_v30, 4  ;;  %v625_v36 = vrot.slane %v622_v31, 4  ;;  %839 = vmatprep.subr.bf16.mxu0 %v1771_v32  ;;  %v1781_v29 = vld [vmem:[#allocation5] sm:$0xff]  }
  0xa7   :  { %840 = vmatpush1.bf16.msra.mxu0 %v1773_v33 }
  0xa8   :  { %v629_v37 = vsel %vm597_vm4, %v624_v30, %v626_v35  ;;  %v627_v38 = vsel %vm186_vm1, %v625_v36, %v626_v35  ;;  %v1678_v30 = vcombine.low %v711_v20, %v711_v20 }
  0xa9   :  { %633 = vst [vmem:[#allocation2 + $0x5c] sm:$0xc] %v629_v37  ;;  %v628_v39 = vsel %vm597_vm4, %v622_v31, %v627_v38  ;;  %v181_v40 = vpop.permute.xlu0 %180  ;;  %v183_v41 = vpop.permute.xlu1 %182 }
  0xaa   :  { %632 = vst [vmem:[#allocation2 + $0x54] sm:$0xcc] %v628_v39  ;;  %v184_v42 = vrot.slane %v181_v40, 4  ;;  %v185_v43 = vrot.slane %v183_v41, 4  ;;  %v822_v39 = vsel %vm808_vm5, %v1678_v30, 0 }
  0xac   :  { %v187_v44 = vsel %vm186_vm1, %v184_v42, %v185_v43  ;;  %v190_v45 = vsel %vm2213_vm6, %v183_v41, %v185_v43 }
  0xad   :  { %v189_v46 = vsel %vm2213_vm6, %v181_v40, %v187_v44  ;;  %194 = vst [vmem:[#allocation2 + $0x8] sm:$0x3] %v190_v45  ;;  %v244_v47 = vpop.permute.xlu0 %243  ;;  %v246_v48 = vpop.permute.xlu1 %245 }
  0xae   :  { %193 = vst [vmem:[#allocation2] sm:$0x33] %v189_v46  ;;  %v247_v49 = vrot.slane %v244_v47, 4  ;;  %v248_v50 = vrot.slane %v246_v48, 4 }
  0xb0   :  { %v249_v51 = vsel %vm186_vm1, %v247_v49, %v248_v50  ;;  %v252_v52 = vsel %vm2212_vm7, %v246_v48, %v248_v50  ;;  %v1785_v40 = vld [vmem:[#allocation2 + $0x44] ss:$24 sps:$4 sm:$0xff]   ;;  %v43_v49 = vand.u32 127, %v42_v0 }
  0xb1   :  { %v251_v53 = vsel %vm2212_vm7, %v244_v47, %v249_v51  ;;  %256 = vst [vmem:[#allocation2 + $0x8] sm:$0xc] %v252_v52  ;;  %v305_v54 = vpop.permute.xlu0 %304  ;;  %v307_v55 = vpop.permute.xlu1 %306  ;;  %v1774_v56 = vld [vmem:[#allocation2 + $0x3c] ss:$24 sps:$4 sm:$0xff]   ;;  %v1783_v44 = vld [vmem:[#allocation2 + $0x40] ss:$24 sps:$4 sm:$0xff]  }
  0xb2   :  { %255 = vst [vmem:[#allocation2] sm:$0xcc] %v251_v53  ;;  %v308_v58 = vrot.slane %v305_v54, 4  ;;  %v309_v59 = vrot.slane %v307_v55, 4  ;;  %882 = vmatprep.subr.bf16.mxu1 %v1774_v56  ;;  %v44_v50 = vadd.s32 128, %v43_v49 }
  0xb3   :  { %883 = vmatpush1.bf16.msra.mxu1 %v1776_v57  ;;  %v2051_v51 = vmul.u32.u64.low 2863311531, %v43_v49  ;;  %v2052_v52 = vmul.u32.u64.high 2863311531, %v43_v49, %v2051_v51 }
  0xb4   :  { %v310_v60 = vsel %vm186_vm1, %v308_v58, %v309_v59  ;;  %v313_v61 = vsel %vm2215_vm8, %v307_v55, %v309_v59  ;;  %v45_v58 = vadd.s32 256, %v43_v49  ;;  %v47_v59 = vadd.s32 512, %v43_v49 }
  0xb5   :  { %v312_v62 = vsel %vm2215_vm8, %v305_v54, %v310_v60  ;;  %317 = vst [vmem:[#allocation2 + $0x20] sm:$0x3] %v313_v61  ;;  %v366_v63 = vpop.permute.xlu0 %365  ;;  %v368_v1 = vpop.permute.xlu1 %367  ;;  %v2054_v53 = vmul.u32.u64.low 2863311531, %v44_v50  ;;  %v2055_v54 = vmul.u32.u64.high 2863311531, %v44_v50, %v2054_v53  ;;  %v55_v55 = vshrl.u32 %v2052_v52, 4 }
  0xb6   :  { %316 = vst [vmem:[#allocation2 + $0x18] sm:$0x33] %v312_v62  ;;  %v369_v2 = vrot.slane %v366_v63, 4  ;;  %v370_v3 = vrot.slane %v368_v1, 4  ;;  %v46_v61 = vadd.s32 384, %v43_v49  ;;  %v48_v62 = vadd.s32 640, %v43_v49 }
  0xb7   :  { %v66_v56 = vshrl.u32 %v2055_v54, 4  ;;  %v56_v57 = vmul.u32 24, %v55_v55 }
  0xb8   :  { %v371_v4 = vsel %vm186_vm1, %v369_v2, %v370_v3  ;;  %v374_v5 = vsel %vm2214_vm9, %v368_v1, %v370_v3  ;;  %v2059_v1 = vmul.u32.u64.low 2863311531, %v45_v58  ;;  %v2060_v0 = vmul.u32.u64.high 2863311531, %v45_v58, %v2059_v1 }
  0xb9   :  { %v373_v6 = vsel %vm2214_vm9, %v366_v63, %v371_v4  ;;  %378 = vst [vmem:[#allocation2 + $0x20] sm:$0xc] %v374_v5  ;;  %v214_v7 = vpop.permute.xlu0 %213  ;;  %v216_v8 = vpop.permute.xlu1 %215  ;;  %v67_v60 = vmul.u32 24, %v66_v56  ;;  %v57_v63 = vsub.s32 %v43_v49, %v56_v57 }
  0xba   :  { %377 = vst [vmem:[#allocation2 + $0x18] sm:$0xcc] %v373_v6  ;;  %v217_v9 = vrot.slane %v214_v7, 4  ;;  %v218_v10 = vrot.slane %v216_v8, 4  ;;  %v2062_v2 = vmul.u32.u64.low 2863311531, %v47_v59  ;;  %v2063_v3 = vmul.u32.u64.high 2863311531, %v47_v59, %v2062_v2 }
  0xbb   :  { %v68_v4 = vsub.s32 %v44_v50, %v67_v60  ;;  %v2065_v5 = vmul.u32.u64.low 2863311531, %v46_v61  ;;  %v2066_v6 = vmul.u32.u64.high 2863311531, %v46_v61, %v2065_v5  ;;  %vm115_vm11 = vcmp.ne.s32.totalorder %v57_v63, 0 }
  0xbc   :  { %v219_v11 = vsel %vm186_vm1, %v217_v9, %v218_v10  ;;  %v221_v12 = vsel %vm2213_vm6, %v216_v8, %v218_v10  ;;  %vm121_vm12 = vcmp.lt.s32.totalorder %v57_v63, 0  ;;  %v133_v9 = vadd.s32 24, %v57_v63 }
  0xbd   :  { %v220_v13 = vsel %vm2213_vm6, %v214_v7, %v219_v11  ;;  %225 = vst [vmem:[#allocation2 + $0x14] sm:$0x3] %v221_v12  ;;  %v275_v14 = vpop.permute.xlu0 %274  ;;  %v277_v15 = vpop.permute.xlu1 %276  ;;  %v2068_v7 = vmul.u32.u64.low 2863311531, %v48_v62  ;;  %v2069_v8 = vmul.u32.u64.high 2863311531, %v48_v62, %v2068_v7  ;;  %vm116_vm13 = vcmp.ne.s32.totalorder %v68_v4, 0  ;;  %vm127_vm15 = vmand %vm121_vm12, %vm115_vm11 }
  0xbe   :  { %224 = vst [vmem:[#allocation2 + $0xc] sm:$0x33] %v220_v13  ;;  %v278_v16 = vrot.slane %v275_v14, 4  ;;  %v279_v17 = vrot.slane %v277_v15, 4  ;;  %vm122_vm14 = vcmp.lt.s32.totalorder %v68_v4, 0  ;;  %v134_v10 = vadd.s32 24, %v68_v4 }
  0xbf   :  { %v77_v11 = vshrl.u32 %v2060_v0, 4  ;;  %v99_v12 = vshrl.u32 %v2063_v3, 4  ;;  %v139_v13 = vsel %vm127_vm15, %v133_v9, %v57_v63 }
  0xc0   :  { %v280_v18 = vsel %vm186_vm1, %v278_v16, %v279_v17  ;;  %v282_v19 = vsel %vm2212_vm7, %v277_v15, %v279_v17  ;;  %v1791_v48 = vld [vmem:[#allocation2 + $0x8] ss:$24 sps:$4 sm:$0xff]   ;;  %v110_v15 = vshrl.u32 %v2069_v8, 4 }
  0xc1   :  { %v281_v21 = vsel %vm2212_vm7, %v275_v14, %v280_v18  ;;  %286 = vst [vmem:[#allocation2 + $0x14] sm:$0xc] %v282_v19  ;;  %v336_v22 = vpop.permute.xlu0 %335  ;;  %v338_v23 = vpop.permute.xlu1 %337  ;;  %v1777_v24 = vld [vmem:[#allocation2 + $0x4] ss:$24 sps:$4 sm:$0xff]   ;;  %v1779_v25 = vld [vmem:[#allocation2] ss:$24 sps:$4 sm:$0xff]  }
  0xc2   :  { %285 = vst [vmem:[#allocation2 + $0xc] sm:$0xcc] %v281_v21  ;;  %v339_v26 = vrot.slane %v336_v22, 4  ;;  %v340_v27 = vrot.slane %v338_v23, 4  ;;  %841 = vmatprep.subr.bf16.mxu0 %v1777_v24  ;;  %v88_v14 = vshrl.u32 %v2066_v6, 4  ;;  %v78_v18 = vmul.u32 24, %v77_v11 }
  0xc3   :  { %842 = vmatpush1.bf16.msra.mxu0 %v1779_v25  ;;  %vm151_vm7 = vcmp.le.s32.totalorder %v139_v13, 16  ;;  %v100_v19 = vmul.u32 24, %v99_v12  ;;  %v1319_v8 = vld [vmem:[%s2210_s4] sm:$0xff] }
  0xc4   :  { %v341_v31 = vsel %vm186_vm1, %v339_v26, %v340_v27  ;;  %v343_v32 = vsel %vm2215_vm8, %v338_v23, %v340_v27  ;;  %1684 = vmatprep.subr.msk.bf16.mxu0 %vm808_vm5, %v1679_v28  ;;  %vm128_vm5 = vmand %vm122_vm14, %vm116_vm13  ;;  %v89_v21 = vmul.u32 24, %v88_v14  ;;  %v111_v23 = vmul.u32 24, %v110_v15 }
  0xc5   :  { %v342_v33 = vsel %vm2215_vm8, %v336_v22, %v341_v31  ;;  %347 = vst [vmem:[#allocation2 + $0x2c] sm:$0x3] %v343_v32  ;;  %v397_v35 = vpop.permute.xlu0 %396  ;;  %v399_v36 = vpop.permute.xlu1 %398  ;;  %v140_v17 = vsel %vm128_vm5, %v134_v10, %v68_v4  ;;  %v79_v25 = vsub.s32 %v45_v58, %v78_v18  ;;  %v101_v28 = vsub.s32 %v47_v59, %v100_v19  ;;  %v713_v10 = vld [vmem:[%s2208_s2 + $0x8] sm:$0xff] }
  0xc6   :  { %346 = vst [vmem:[#allocation2 + $0x24] sm:$0x33] %v342_v33  ;;  %v400_v37 = vrot.slane %v397_v35, 4  ;;  %v401_v38 = vrot.slane %v399_v36, 4  ;;  %1681 = vmatmul.mubr.msk.bf16.vlgmr.msra.gmra.mxu0 %vm804_vm10, %v1781_v29  ;;  %vm146_vm11 = vcmp.ge.s32.totalorder %v140_v17, 1  ;;  %vm152_vm12 = vcmp.le.s32.totalorder %v140_v17, 16 }
  0xc7   :  { %924 = vmatpush1.bf16.msra.mxu0 %v822_v39  ;;  %945 = vmatprep.mubr.bf16.mxu0 %v1876_v34  ;;  %vm158_vm14 = vmand %vm146_vm11, %vm152_vm12  ;;  %v112_v32 = vsub.s32 %v48_v62, %v111_v23  ;;  %vm117_vm15 = vcmp.ne.s32.totalorder %v79_v25, 0  ;;  %vm123_vm5 = vcmp.lt.s32.totalorder %v79_v25, 0  ;;  %vm119_vm6 = vcmp.ne.s32.totalorder %v101_v28, 0 }
  0xc8   :  { %v402_v41 = vsel %vm186_vm1, %v400_v37, %v401_v38  ;;  %v404_v42 = vsel %vm2214_vm9, %v399_v36, %v401_v38  ;;  %925 = vmatprep.subr.bf16.mxu0 %v1785_v40  ;;  %v135_v36 = vadd.s32 24, %v79_v25  ;;  %vm129_vm8 = vmand %vm123_vm5, %vm117_vm15  ;;  %v137_v38 = vadd.s32 24, %v101_v28 }
  0xc9   :  { %v403_v43 = vsel %vm2214_vm9, %v397_v35, %v402_v41  ;;  %408 = vst [vmem:[#allocation2 + $0x2c] sm:$0xc] %v404_v42  ;;  %vm125_vm9 = vcmp.lt.s32.totalorder %v101_v28, 0  ;;  %vm120_vm0 = vcmp.ne.s32.totalorder %v112_v32, 0  ;;  %vm126_vm11 = vcmp.lt.s32.totalorder %v112_v32, 0 }
  0xca   :  { %407 = vst [vmem:[#allocation2 + $0x24] sm:$0xcc] %v403_v43  ;;  %vm131_vm12 = vmand %vm125_vm9, %vm119_vm6  ;;  %v138_v40 = vadd.s32 24, %v112_v32  ;;  %v141_v41 = vsel %vm129_vm8, %v135_v36, %v79_v25 }
  0xcb   :  { %926 = vmatpush1.bf16.msra.mxu0 %v1783_v44  ;;  %v143_v43 = vsel %vm131_vm12, %v137_v38, %v101_v28  ;;  %vm147_vm15 = vcmp.ge.s32.totalorder %v141_v41, 1  ;;  %vm153_vm5 = vcmp.le.s32.totalorder %v141_v41, 16 }
  0xcc   :  { %vm149_vm6 = vcmp.ge.s32.totalorder %v143_v43, 1  ;;  %vm155_vm9 = vcmp.le.s32.totalorder %v143_v43, 16  ;;  %vm159_vm8 = vmand %vm147_vm15, %vm153_vm5  ;;  %vm2217_vm15 = vcmask 1039360  }
  0xcd   :  { %vm161_vm12 = vmand %vm149_vm6, %vm155_vm9  ;;  %vm2219_vm6 = vcmask 187392  }
  0xce   :  { %vm2218_vm5 = vmmov %vm2217_vm15 }
  0xcf   :  { %vm2220_vm9 = vmmov %vm2219_vm6 }
  0xd0   :  { %v1790_v47 = vld [vmem:[#allocation2 + $0x14] ss:$24 sps:$4 sm:$0xff]  }
  0xd1   :  { %v1786_v45 = vld [vmem:[#allocation2 + $0xc] ss:$24 sps:$4 sm:$0xff]   ;;  %v1788_v46 = vld [vmem:[#allocation2 + $0x10] ss:$24 sps:$4 sm:$0xff]   ;;  %927 = vmatprep.subr.bf16.mxu0 %v1790_v47 }
  0xd2   :  { %884 = vmatprep.subr.bf16.mxu1 %v1786_v45  ;;  %928 = vmatpush1.bf16.msra.mxu0 %v1788_v46  ;;  %v2075_v16 = vpop.permute.xlu0 %716 }
  0xd3   :  { %885 = vmatpush1.bf16.msra.mxu1 %v1791_v48 }
  0xd5   :  { %1685 = vmatmul.mubr.msk.bf16.vlgmr.msra.gmra.mxu0 %vm804_vm10, %v1781_v29 }
  0xd6   :  { %1683 = vmatmul.mubr.msk.bf16.vlgmr.msra.gmra.mxu1 %vm804_vm10, %v1781_v29  ;;  %1556 = vmatprep.mubr.bf16.mxu0 %v1876_v34  ;;  %vm145_vm10 = vcmp.ge.s32.totalorder %v139_v13, 1  ;;  %v90_v29 = vsub.s32 %v46_v61, %v89_v21 }
  0xd7   :  { %1515 = vmatprep.mubr.bf16.mxu1 %v1876_v34  ;;  %vm157_vm13 = vmand %vm145_vm10, %vm151_vm7 }
  0xd8   :  { %vm118_vm7 = vcmp.ne.s32.totalorder %v90_v29, 0  ;;  %vm124_vm10 = vcmp.lt.s32.totalorder %v90_v29, 0  ;;  %v136_v39 = vadd.s32 24, %v90_v29 }
 0x186   :  { %v861_v20 = vpop.f32.mrf.mxu0 }
 0x187   :  { %v862_v22 = vadd.f32 %v861_v20, %v2075_v16 }
 0x188   :  { %v863_v24 = vpop.f32.mrf.mxu0 }
 0x189   :  { %v864_v26 = vadd.f32 %v863_v24, %v2075_v16  ;;  %v956_v27 = vmax.f32 %v862_v22, 0.0 }
 0x18a   :  { %v2081_v37 = vpop.f32.mrf.mxu0 }
 0x18b   :  { %v957_v30 = vmax.f32 %v864_v26, 0.0  ;;  %v974_v31 = vsel %vm157_vm13, %v956_v27, 0.0  ;;  %vm130_vm13 = vmand %vm124_vm10, %vm118_vm7 }
 0x18c   :  { %v2086_v42 = vpop.f32.mrf.mxu0  ;;  %v142_v44 = vsel %vm130_vm13, %v136_v39, %v90_v29 }
 0x18d   :  { %v975_v33 = vsel %vm158_vm14, %v957_v30, 0.0  ;;  %vm132_vm14 = vmand %vm126_vm11, %vm120_vm0  ;;  %vm148_vm7 = vcmp.ge.s32.totalorder %v142_v44, 1  ;;  %vm154_vm10 = vcmp.le.s32.totalorder %v142_v44, 16 }
 0x18e   :  { %v2079_v35 = vpack.c.bf16 %v975_v33, %v974_v31  ;;  %v144_v45 = vsel %vm132_vm14, %v138_v40, %v112_v32  ;;  %vm160_vm13 = vmand %vm148_vm7, %vm154_vm10  ;;  %vm2221_vm7 = vcmask 7168  }
 0x18f   :  { %vm150_vm0 = vcmp.ge.s32.totalorder %v144_v45, 1  ;;  %vm156_vm11 = vcmp.le.s32.totalorder %v144_v45, 16  ;;  %vm2222_vm10 = vmmov %vm2221_vm7 }
 0x190   :  { %996 = vst [vmem:[#allocation4 + $0x4] sm:$0xff] %v2079_v35  ;;  %1193 = vrot.lane.b32.xlu0 %v2079_v35, %s1869_s6  ;;  %vm162_vm14 = vmand %vm150_vm0, %vm156_vm11  ;;  %vm2225_vm11 = vcmask 195584  }
 0x194   :  { %1227 = vrot.lane.b32.xlu0 %v2079_v35, %s1871_s10 }
 0x195   :  { %v947_v48 = vpop.f32.mrf.mxu0 }
 0x196   :  { %v904_v46 = vpop.f32.mrf.mxu1  ;;  %v948_v49 = vadd.f32 %v947_v48, %v2075_v16 }
 0x197   :  { %v905_v47 = vadd.f32 %v904_v46, %v2075_v16  ;;  %v949_v53 = vpop.f32.mrf.mxu0  ;;  %v1079_v54 = vld [vmem:[#allocation4] sm:$0xff] }
 0x198   :  { %v906_v50 = vpop.f32.mrf.mxu1  ;;  %1159 = vrot.lane.b32.xlu0 %v2079_v35, %s1870_s7  ;;  %v960_v55 = vmax.f32 %v948_v49, 0.0  ;;  %v950_v56 = vadd.f32 %v949_v53, %v2075_v16 }
 0x199   :  { %v958_v51 = vmax.f32 %v905_v47, 0.0  ;;  %v907_v52 = vadd.f32 %v906_v50, %v2075_v16 }
 0x19a   :  { %v961_v60 = vmax.f32 %v950_v56, 0.0  ;;  %v978_v61 = vsel %vm161_vm12, %v960_v55, 0.0  ;;  %vm2226_vm12 = vmmov %vm2225_vm11 }
 0x19b   :  { %v976_v57 = vsel %vm159_vm8, %v958_v51, 0.0  ;;  %v959_v58 = vmax.f32 %v907_v52, 0.0  ;;  %vm2223_vm8 = vcmask 203776  }
 0x19c   :  { %v1727_v59 = vpack.c.bf16 %v976_v57, %v976_v57  ;;  %1083 = vrot.lane.b32.xlu0 %v1079_v54, %s1874_s17  ;;  %v979_v1 = vsel %vm162_vm14, %v961_v60, 0.0  ;;  %vm2224_vm0 = vmmov %vm2223_vm8 }
 0x19d   :  { %v977_v62 = vsel %vm160_vm13, %v959_v58, 0.0  ;;  %v1729_v0 = vpack.c.bf16 %v979_v1, %v979_v1  ;;  %vm1460_vm13 = vcmask 588800  }
 0x19e   :  { %997 = vst [vmem:[#allocation4 + $0xc] sm:$0xf] %v1727_v59  ;;  %v1728_v63 = vpack.c.bf16 %v978_v61, %v977_v62 }
 0x19f   :  { %1010 = vst [vmem:[#allocation4 + $0x20] sm:$0xf] %v1729_v0 }
 0x1a0   :  { %1009 = vst [vmem:[#allocation4 + $0x18] sm:$0xff] %v1728_v63  ;;  %1117 = vrot.lane.b32.xlu0 %v1079_v54, %s1875_s18  ;;  %1153 = vst [vmem:[#allocation3 + $0x6c] sm:$0xff] %v1728_v63 }
 0x1a4   :  { %1015 = vrot.lane.b32.xlu0 %v1079_v54, %s1872_s13 }
 0x1a5   :  { %v1258_v2 = vld [vmem:[#allocation4 + $0xc] sm:$0xff] }
 0x1a6   :  { %v1148_v3 = vld [vmem:[#allocation4 + $0xc] sm:$0xf]  ;;  %1263 = vrot.lane.b32.xlu1 %v1258_v2, %s1868_s1  ;;  %v1152_v4 = vld [vmem:[#allocation4 + $0x20] sm:$0xf] }
 0x1a7   :  { %1150 = vst [vmem:[#allocation3 + $0x68] sm:$0xf] %v1148_v3  ;;  %1154 = vst [vmem:[#allocation3 + $0x74] sm:$0xf] %v1152_v4  ;;  %v1080_v5 = vld [vmem:[#allocation4 + $0x8] sm:$0xff]  ;;  %v1096_v6 = vld [vmem:[#allocation4 + $0x14] sm:$0xff] }
 0x1a8   :  { %1049 = vrot.lane.b32.xlu0 %v1079_v54, %s1873_s14  ;;  %v1275_v7 = vld [vmem:[#allocation4 + $0x20] sm:$0xff] }
 0x1a9   :  { %v1097_v9 = vld [vmem:[#allocation4 + $0x1c] sm:$0xff] }
 0x1aa   :  { %1195 = vrot.lane.b32.xlu1 %v1258_v2, %s1869_s6 }
 0x1ac   :  { %1278 = vrot.lane.b32.xlu0 %v1728_v63, %s1868_s1 }
 0x1ae   :  { %1229 = vrot.lane.b32.xlu1 %v1258_v2, %s1871_s10 }
 0x1b0   :  { %1210 = vrot.lane.b32.xlu0 %v1728_v63, %s1869_s6 }
 0x1b2   :  { %1161 = vrot.lane.b32.xlu1 %v1258_v2, %s1870_s7 }
 0x1b4   :  { %1244 = vrot.lane.b32.xlu0 %v1728_v63, %s1871_s10 }
 0x1b6   :  { %1261 = vrot.lane.b32.xlu1 %v2079_v35, %s1868_s1 }
 0x1b8   :  { %1176 = vrot.lane.b32.xlu0 %v1728_v63, %s1870_s7 }
 0x1ba   :  { %1085 = vrot.lane.b32.xlu1 %v1080_v5, %s1874_s17 }
 0x1bc   :  { %1100 = vrot.lane.b32.xlu0 %v1096_v6, %s1874_s17 }
 0x1be   :  { %1119 = vrot.lane.b32.xlu1 %v1080_v5, %s1875_s18 }
 0x1c0   :  { %1134 = vrot.lane.b32.xlu0 %v1096_v6, %s1875_s18 }
 0x1c2   :  { %1017 = vrot.lane.b32.xlu1 %v1080_v5, %s1872_s13 }
 0x1c4   :  { %1032 = vrot.lane.b32.xlu0 %v1096_v6, %s1872_s13 }
 0x1c6   :  { %1051 = vrot.lane.b32.xlu1 %v1080_v5, %s1873_s14 }
 0x1c8   :  { %1066 = vrot.lane.b32.xlu0 %v1096_v6, %s1873_s14 }
 0x1ca   :  { %1280 = vrot.lane.b32.xlu1 %v1275_v7, %s1868_s1 }
 0x1cc   :  { %1322 = vperm.xlu0 %1757, %v1319_v8  }
 0x1ce   :  { %1212 = vrot.lane.b32.xlu1 %v1275_v7, %s1869_s6 }
 0x1d2   :  { %1246 = vrot.lane.b32.xlu1 %v1275_v7, %s1871_s10 }
 0x1d6   :  { %1178 = vrot.lane.b32.xlu1 %v1275_v7, %s1870_s7 }
 0x1da   :  { %1102 = vrot.lane.b32.xlu1 %v1097_v9, %s1874_s17 }
 0x1de   :  { %1136 = vrot.lane.b32.xlu1 %v1097_v9, %s1875_s18 }
 0x1e2   :  { %1034 = vrot.lane.b32.xlu1 %v1097_v9, %s1872_s13 }
 0x1e6   :  { %1068 = vrot.lane.b32.xlu1 %v1097_v9, %s1873_s14 }
 0x1ea   :  { %721 = vperm.xlu1 %1758, %v713_v10  }
 0x202   :  { %v1194_v11 = vpop.permute.xlu0 %1193 }
 0x203   :  { %v1197_v20 = vrot.slane %v1194_v11, 4 }
 0x206   :  { %v1228_v12 = vpop.permute.xlu0 %1227 }
 0x207   :  { %v1231_v27 = vrot.slane %v1228_v12, 4 }
 0x20a   :  { %v1160_v13 = vpop.permute.xlu0 %1159 }
 0x20b   :  { %v1163_v33 = vrot.slane %v1160_v13, 4 }
 0x20e   :  { %v1084_v14 = vpop.permute.xlu0 %1083 }
 0x20f   :  { %v1087_v49 = vrot.slane %v1084_v14, 4 }
 0x212   :  { %v1118_v17 = vpop.permute.xlu0 %1117 }
 0x213   :  { %v1121_v59 = vrot.slane %v1118_v17, 4 }
 0x216   :  { %v1016_v25 = vpop.permute.xlu0 %1015 }
 0x217   :  { %v1019_v4 = vrot.slane %v1016_v25, 4 }
 0x218   :  { %v1264_v15 = vpop.permute.xlu1 %1263 }
 0x219   :  { %v1266_v16 = vrot.slane %v1264_v15, 4 }
 0x21a   :  { %v1050_v38 = vpop.permute.xlu0 %1049 }
 0x21b   :  { %v1269_v18 = vsel %vm658_vm2, %v1264_v15, %v1266_v16 }
 0x21c   :  { %1273 = vst [vmem:[#allocation3 + $0xc8] sm:$0xf] %v1269_v18  ;;  %v1196_v19 = vpop.permute.xlu1 %1195 }
 0x21d   :  { %v1198_v21 = vrot.slane %v1196_v19, 4 }
 0x21e   :  { %v1279_v46 = vpop.permute.xlu0 %1278 }
 0x21f   :  { %v1199_v22 = vsel %vm186_vm1, %v1197_v20, %v1198_v21  ;;  %v1201_v23 = vsel %vm536_vm3, %v1196_v19, %v1198_v21  ;;  %v1282_v19 = vrot.slane %v1279_v46, 4 }
 0x220   :  { %v1200_v24 = vsel %vm536_vm3, %v1194_v11, %v1199_v22  ;;  %1205 = vst [vmem:[#allocation3 + $0x98] sm:$0xf] %v1201_v23  ;;  %v1230_v26 = vpop.permute.xlu1 %1229 }
 0x221   :  { %v1232_v28 = vrot.slane %v1230_v26, 4 }
 0x222   :  { %v1211_v61 = vpop.permute.xlu0 %1210 }
 0x223   :  { %v1233_v29 = vsel %vm186_vm1, %v1231_v27, %v1232_v28  ;;  %v1235_v30 = vsel %vm597_vm4, %v1230_v26, %v1232_v28  ;;  %v2166_v28 = vld [vmem:[%s2209_s3] sm:$0xf]  ;;  %s1877_s3 = smov [#allocation8]  }
 0x224   :  { %v1234_v31 = vsel %vm597_vm4, %v1228_v12, %v1233_v29  ;;  %1239 = vst [vmem:[#allocation3 + $0xb0] sm:$0xf] %v1235_v30  ;;  %v1162_v32 = vpop.permute.xlu1 %1161  ;;  %v1214_v29 = vrot.slane %v1211_v61, 4  ;;  %s1636_s24 = sshll.u32 %s1877_s3, 4  ;;  %s1637_s24 = int_to_ptr.vmem [resolvable:$true] %s1636_s24 }
 0x225   :  { %v1164_v36 = vrot.slane %v1162_v32, 4  ;;  %v1709_v56 = vcombine.high %v1200_v24, %v1234_v31  ;;  %v1708_v62 = vcombine.low %v1200_v24, %v1234_v31  ;;  %s1840_s25 = scalar_lea.vmem %s1637_s24, 768  ;;  %p1845_p6 = scmp.lt.s32.totalorder %s1637_s24, %s1637_s24 }
 0x226   :  { %v1245_v10 = vpop.permute.xlu0 %1244  ;;  %p1841_p5 = scmp.ne.s32.totalorder %s1637_s24, %s1840_s25  ;;  %p1846_p7 = scmp.lt.s32.totalorder %s1840_s25, %s1840_s25 }
 0x227   :  { %v1165_v39 = vsel %vm186_vm1, %v1163_v33, %v1164_v36  ;;  %v1167_v40 = vsel %vm2217_vm15, %v1162_v32, %v1164_v36  ;;  %vm2231_vm15 = vmmov %vm2221_vm7 }
 0x228   :  { %v1166_v41 = vsel %vm2218_vm5, %v1160_v13, %v1165_v39  ;;  %1171 = vst [vmem:[#allocation3 + $0x80] sm:$0xf] %v1167_v40  ;;  %v1262_v43 = vpop.permute.xlu1 %1261  ;;  %v1053_v13 = vrot.slane %v1050_v38, 4  ;;  %v1248_v39 = vrot.slane %v1245_v10, 4  ;;  %p1847_p8 = por %p1846_p7, %p1845_p6 }
 0x229   :  { %v1265_v44 = vrot.slane %v1262_v43, 4  ;;  %v1703_v0 = vcombine.high %v2079_v35, %v1166_v41  ;;  %v1702_v6 = vcombine.low %v2079_v35, %v1166_v41 }
 0x22a   :  { %v1177_v23 = vpop.permute.xlu0 %1176  ;;  %p1848_p9 = pnand %p1847_p8, %p1841_p5 }
 0x22b   :  { %v1267_v45 = vsel %vm186_vm1, %v1265_v44, %v1266_v16  ;;  %v1180_v44 = vrot.slane %v1177_v23, 4 }
 0x22c   :  { %v1268_v47 = vsel %vm658_vm2, %v1262_v43, %v1267_v45  ;;  %v1086_v48 = vpop.permute.xlu1 %1085 }
 0x22d   :  { %v1088_v50 = vrot.slane %v1086_v48, 4  ;;  %v1715_v51 = vcombine.high %v1268_v47, %v1268_v47  ;;  %v1714_v52 = vcombine.low %v1268_v47, %v1268_v47 }
 0x22e   :  { %v1101_v33 = vpop.permute.xlu0 %1100 }
 0x22f   :  { %v1089_v53 = vsel %vm186_vm1, %v1087_v49, %v1088_v50  ;;  %v1091_v54 = vsel %vm2219_vm6, %v1086_v48, %v1088_v50  ;;  %1720 = vmatprep.subr.msk.bf16.mxu1 %vm186_vm1, %v1715_v51  ;;  %v1466_v55 = vsel %vm186_vm1, %v1714_v52, 0 }
 0x230   :  { %v1090_v57 = vsel %vm2220_vm9, %v1084_v14, %v1089_v53  ;;  %1095 = vst [vmem:[#allocation3 + $0x38] sm:$0xf] %v1091_v54  ;;  %v1120_v58 = vpop.permute.xlu1 %1119  ;;  %1490 = vmatpush1.bf16.msra.mxu1 %v1466_v55  ;;  %vm2234_vm9 = vmmov %vm2224_vm0 }
 0x231   :  { %v1122_v60 = vrot.slane %v1120_v58, 4  ;;  %1491 = vmatprep.subr.bf16.mxu1 %v1709_v56 }
 0x233   :  { %v1123_v63 = vsel %vm186_vm1, %v1121_v59, %v1122_v60  ;;  %v1125_v1 = vsel %vm2221_vm7, %v1120_v58, %v1122_v60  ;;  %v1104_v60 = vrot.slane %v1101_v33, 4 }
 0x234   :  { %v1124_v2 = vsel %vm2222_vm10, %v1118_v17, %v1123_v63  ;;  %1129 = vst [vmem:[#allocation3 + $0x50] sm:$0xf] %v1125_v1  ;;  %v1018_v3 = vpop.permute.xlu1 %1017  ;;  %1492 = vmatpush1.bf16.msra.mxu1 %v1708_v62 }
 0x235   :  { %v1020_v5 = vrot.slane %v1018_v3, 4  ;;  %1493 = vmatprep.subr.bf16.mxu1 %v1703_v0  ;;  %v1697_v9 = vcombine.high %v1090_v57, %v1124_v2  ;;  %v1696_v15 = vcombine.low %v1090_v57, %v1124_v2 }
 0x237   :  { %v1021_v7 = vsel %vm186_vm1, %v1019_v4, %v1020_v5  ;;  %v1023_v8 = vsel %vm2223_vm8, %v1018_v3, %v1020_v5  ;;  %v1796_v4 = vld [vmem:[#allocation3 + $0x98] ss:$24 sps:$4 sm:$0xff]  }
 0x238   :  { %v1022_v11 = vsel %vm2224_vm0, %v1016_v25, %v1021_v7  ;;  %1027 = vst [vmem:[#allocation3 + $0x8] sm:$0xf] %v1023_v8  ;;  %v1052_v12 = vpop.permute.xlu1 %1051  ;;  %1494 = vmatpush1.bf16.msra.mxu1 %v1702_v6 }
 0x239   :  { %v1054_v14 = vrot.slane %v1052_v12, 4  ;;  %1495 = vmatprep.subr.bf16.mxu1 %v1697_v9 }
 0x23b   :  { %v1055_v16 = vsel %vm186_vm1, %v1053_v13, %v1054_v14  ;;  %v1057_v17 = vsel %vm2225_vm11, %v1052_v12, %v1054_v14  ;;  %v1802_v14 = vld [vmem:[#allocation3 + $0x68] ss:$24 sps:$4 sm:$0xff]  }
 0x23c   :  { %v1056_v35 = vsel %vm2226_vm12, %v1050_v38, %v1055_v16  ;;  %1061 = vst [vmem:[#allocation3 + $0x20] sm:$0xf] %v1057_v17  ;;  %v1281_v18 = vpop.permute.xlu1 %1280  ;;  %1496 = vmatpush1.bf16.msra.mxu1 %v1696_v15 }
 0x23d   :  { %v1283_v20 = vrot.slane %v1281_v18, 4  ;;  %v1690_v21 = vcombine.low %v1022_v11, %v1056_v35  ;;  %v1691_v22 = vcombine.high %v1022_v11, %v1056_v35 }
 0x23f   :  { %v1284_v24 = vsel %vm186_vm1, %v1282_v19, %v1283_v20  ;;  %v1286_v25 = vsel %vm658_vm2, %v1281_v18, %v1283_v20  ;;  %1497 = vmatprep.subr.bf16.mxu1 %v1691_v22 }
 0x240   :  { %v1285_v26 = vsel %vm658_vm2, %v1279_v46, %v1284_v24  ;;  %1290 = vst [vmem:[#allocation3 + $0xd4] sm:$0xf] %v1286_v25  ;;  %v1213_v27 = vpop.permute.xlu1 %1212  ;;  %1498 = vmatpush1.bf16.msra.mxu1 %v1690_v21  ;;  %vm2227_vm2 = vmmov %vm2218_vm5 }
 0x241   :  { %1289 = vst [vmem:[#allocation3 + $0xcc] sm:$0xff] %v1285_v26  ;;  %v1215_v30 = vrot.slane %v1213_v27, 4  ;;  %vm2232_vm5 = vmmov %vm2221_vm7 }
 0x242   :  { %vm2235_vm7 = vmmov %vm2225_vm11 }
 0x243   :  { %v1216_v31 = vsel %vm186_vm1, %v1214_v29, %v1215_v30  ;;  %v1218_v32 = vsel %vm536_vm3, %v1213_v27, %v1215_v30  ;;  %1721 = vmatmul.mubr.msk.bf16.vlgmr.msra.gmra.mxu1 %vm1460_vm13, %v2166_v28  ;;  %vm2236_vm10 = vmmov %vm2235_vm7  ;;  %v1808_v29 = vld [vmem:[#allocation3 + $0x38] ss:$24 sps:$4 sm:$0xff]  }
 0x244   :  { %v1217_v36 = vsel %vm536_vm3, %v1211_v61, %v1216_v31  ;;  %1222 = vst [vmem:[#allocation3 + $0xa4] sm:$0xf] %v1218_v32  ;;  %v1247_v38 = vpop.permute.xlu1 %1246  ;;  %1597 = vmatprep.mubr.bf16.mxu1 %v1876_v34  ;;  %v1135_v34 = vpop.permute.xlu0 %1134  ;;  %vm2228_vm3 = vmmov %vm2227_vm2 }
 0x245   :  { %1221 = vst [vmem:[#allocation3 + $0x9c] sm:$0xff] %v1217_v36  ;;  %v1249_v40 = vrot.slane %v1247_v38, 4  ;;  %v1138_v1 = vrot.slane %v1135_v34, 4 }
 0x247   :  { %v1250_v41 = vsel %vm186_vm1, %v1248_v39, %v1249_v40  ;;  %v1252_v43 = vsel %vm597_vm4, %v1247_v38, %v1249_v40  ;;  %v908_v40 = vpop.f32.mrf.mxu1 }
 0x248   :  { %v1251_v45 = vsel %vm597_vm4, %v1245_v10, %v1250_v41  ;;  %1256 = vst [vmem:[#allocation3 + $0xbc] sm:$0xf] %v1252_v43  ;;  %v1179_v46 = vpop.permute.xlu1 %1178  ;;  %v1317_v47 = vld [vmem:[#allocation3 + $0xc8] sm:$0xff]  ;;  %v1318_v48 = vld [vmem:[#allocation3 + $0xd0] sm:$0xff]  ;;  %vm2229_vm4 = vmmov %vm2219_vm6  ;;  %v1033_v0 = vpop.permute.xlu0 %1032 }
 0x249   :  { %1255 = vst [vmem:[#allocation3 + $0xb4] sm:$0xff] %v1251_v45  ;;  %v1181_v49 = vrot.slane %v1179_v46, 4  ;;  %v1717_v50 = vcombine.high %v1317_v47, %v1317_v47  ;;  %v1719_v51 = vcombine.high %v1318_v48, %v1318_v48  ;;  %v1716_v52 = vcombine.low %v1317_v47, %v1317_v47  ;;  %vm2230_vm14 = vmmov %vm2229_vm4  ;;  %v910_v41 = vpop.f32.mrf.mxu1 }
 0x24a   :  { %v1718_v53 = vcombine.low %v1318_v48, %v1318_v48  ;;  %v1036_v11 = vrot.slane %v1033_v0, 4  ;;  %vm2233_vm6 = vmmov %vm2224_vm0 }
 0x24b   :  { %v1182_v54 = vsel %vm186_vm1, %v1180_v44, %v1181_v49  ;;  %v1184_v55 = vsel %vm2227_vm2, %v1179_v46, %v1181_v49  ;;  %1722 = vmatprep.subr.msk.bf16.mxu0 %vm186_vm1, %v1717_v50  ;;  %1724 = vmatprep.subr.msk.bf16.mxu1 %vm186_vm1, %v1719_v51  ;;  %v1472_v56 = vsel %vm186_vm1, %v1716_v52, 0 }
 0x24c   :  { %v1183_v57 = vsel %vm2228_vm3, %v1177_v23, %v1182_v54  ;;  %1188 = vst [vmem:[#allocation3 + $0x8c] sm:$0xf] %v1184_v55  ;;  %v1103_v58 = vpop.permute.xlu1 %1102  ;;  %1531 = vmatpush1.bf16.msra.mxu0 %v1472_v56  ;;  %v1478_v59 = vsel %vm186_vm1, %v1718_v53, 0  ;;  %v1067_v18 = vpop.permute.xlu0 %1066 }
 0x24d   :  { %1187 = vst [vmem:[#allocation3 + $0x84] sm:$0xff] %v1183_v57  ;;  %v1105_v61 = vrot.slane %v1103_v58, 4  ;;  %1572 = vmatpush1.bf16.msra.mxu1 %v1478_v59  ;;  %v1070_v23 = vrot.slane %v1067_v18, 4  ;;  %v951_v57 = vpop.f32.mrf.mxu0 }
 0x24f   :  { %v1106_v62 = vsel %vm186_vm1, %v1104_v60, %v1105_v61  ;;  %v1108_v63 = vsel %vm2229_vm4, %v1103_v58, %v1105_v61  ;;  %v1801_v8 = vld [vmem:[#allocation3 + $0xa4] ss:$24 sps:$4 sm:$0xff]   ;;  %v953_v58 = vpop.f32.mrf.mxu0 }
 0x250   :  { %v1107_v2 = vsel %vm2230_vm14, %v1101_v33, %v1106_v62  ;;  %1112 = vst [vmem:[#allocation3 + $0x44] sm:$0xf] %v1108_v63  ;;  %v1137_v3 = vpop.permute.xlu1 %1136  ;;  %v1798_v5 = vld [vmem:[#allocation3 + $0x9c] ss:$24 sps:$4 sm:$0xff]   ;;  %v1799_v7 = vld [vmem:[#allocation3 + $0xa0] ss:$24 sps:$4 sm:$0xff]   ;;  %1573 = vmatprep.subr.bf16.mxu1 %v1801_v8  ;;  %v1323_v43 = vpop.permute.xlu0 %1322 }
 0x251   :  { %1111 = vst [vmem:[#allocation3 + $0x3c] sm:$0xff] %v1107_v2  ;;  %v1139_v6 = vrot.slane %v1137_v3, 4  ;;  %1532 = vmatprep.subr.bf16.mxu0 %v1798_v5  ;;  %1574 = vmatpush1.bf16.msra.mxu1 %v1799_v7  ;;  %v1814_v33 = vld [vmem:[#allocation3 + $0x8] ss:$24 sps:$4 sm:$0xff]  }
 0x252   :  { %1533 = vmatpush1.bf16.msra.mxu0 %v1796_v4 }
 0x253   :  { %v1140_v9 = vsel %vm186_vm1, %v1138_v1, %v1139_v6  ;;  %v1142_v10 = vsel %vm2231_vm15, %v1137_v3, %v1139_v6  ;;  %v1807_v35 = vld [vmem:[#allocation3 + $0x74] ss:$24 sps:$4 sm:$0xff]  }
 0x254   :  { %v1141_v12 = vsel %vm2232_vm5, %v1135_v34, %v1140_v9  ;;  %1146 = vst [vmem:[#allocation3 + $0x5c] sm:$0xf] %v1142_v10  ;;  %v1035_v13 = vpop.permute.xlu1 %1034  ;;  %v1804_v15 = vld [vmem:[#allocation3 + $0x6c] ss:$24 sps:$4 sm:$0xff]   ;;  %v1805_v17 = vld [vmem:[#allocation3 + $0x70] ss:$24 sps:$4 sm:$0xff]   ;;  %1575 = vmatprep.subr.bf16.mxu1 %v1807_v35 }
 0x255   :  { %1145 = vst [vmem:[#allocation3 + $0x54] sm:$0xff] %v1141_v12  ;;  %v1037_v16 = vrot.slane %v1035_v13, 4  ;;  %1534 = vmatprep.subr.bf16.mxu0 %v1804_v15  ;;  %1576 = vmatpush1.bf16.msra.mxu1 %v1805_v17 }
 0x256   :  { %1535 = vmatpush1.bf16.msra.mxu0 %v1802_v14 }
 0x257   :  { %v1038_v19 = vsel %vm186_vm1, %v1036_v11, %v1037_v16  ;;  %v1040_v20 = vsel %vm2233_vm6, %v1035_v13, %v1037_v16 }
 0x258   :  { %v1039_v21 = vsel %vm2234_vm9, %v1033_v0, %v1038_v19  ;;  %1044 = vst [vmem:[#allocation3 + $0x14] sm:$0xf] %v1040_v20  ;;  %v1069_v22 = vpop.permute.xlu1 %1068 }
 0x259   :  { %1043 = vst [vmem:[#allocation3 + $0xc] sm:$0xff] %v1039_v21  ;;  %v1071_v24 = vrot.slane %v1069_v22, 4 }
 0x25b   :  { %v1072_v25 = vsel %vm186_vm1, %v1070_v23, %v1071_v24  ;;  %v1074_v26 = vsel %vm2235_vm7, %v1069_v22, %v1071_v24  ;;  %v1813_v32 = vld [vmem:[#allocation3 + $0x44] ss:$24 sps:$4 sm:$0xff]  }
 0x25c   :  { %v1073_v27 = vsel %vm2236_vm10, %v1067_v18, %v1072_v25  ;;  %1078 = vst [vmem:[#allocation3 + $0x2c] sm:$0xf] %v1074_v26  ;;  %v1810_v30 = vld [vmem:[#allocation3 + $0x3c] ss:$24 sps:$4 sm:$0xff]   ;;  %v1811_v31 = vld [vmem:[#allocation3 + $0x40] ss:$24 sps:$4 sm:$0xff]   ;;  %1577 = vmatprep.subr.bf16.mxu1 %v1813_v32 }
 0x25d   :  { %1077 = vst [vmem:[#allocation3 + $0x24] sm:$0xff] %v1073_v27  ;;  %1536 = vmatprep.subr.bf16.mxu0 %v1810_v30  ;;  %1578 = vmatpush1.bf16.msra.mxu1 %v1811_v31 }
 0x25e   :  { %1537 = vmatpush1.bf16.msra.mxu0 %v1808_v29 }
 0x263   :  { %v1819_v39 = vld [vmem:[#allocation3 + $0x14] ss:$24 sps:$4 sm:$0xff]  }
 0x264   :  { %v1816_v36 = vld [vmem:[#allocation3 + $0xc] ss:$24 sps:$4 sm:$0xff]   ;;  %v1817_v38 = vld [vmem:[#allocation3 + $0x10] ss:$24 sps:$4 sm:$0xff]   ;;  %1579 = vmatprep.subr.bf16.mxu1 %v1819_v39 }
 0x265   :  { %1538 = vmatprep.subr.bf16.mxu0 %v1816_v36  ;;  %1580 = vmatpush1.bf16.msra.mxu1 %v1817_v38  ;;  %v722_v44 = vpop.permute.xlu1 %721 }
 0x266   :  { %1539 = vmatpush1.bf16.msra.mxu0 %v1814_v33  ;;  %v866_v48 = vadd.f32 %v2081_v37, %v722_v44  ;;  %v868_v34 = vadd.f32 %v2086_v42, %v722_v44  ;;  %v909_v63 = vadd.f32 %v908_v40, %v722_v44  ;;  %v952_v3 = vadd.f32 %v951_v57, %v722_v44 }
 0x267   :  { %v911_v7 = vadd.f32 %v910_v41, %v722_v44  ;;  %v954_v11 = vadd.f32 %v953_v58, %v722_v44 }
 0x268   :  { %1725 = vmatmul.mubr.msk.bf16.vlgmr.msra.gmra.mxu1 %vm1460_vm13, %v2166_v28 }
 0x269   :  { %1723 = vmatmul.mubr.msk.bf16.vlgmr.msra.gmra.mxu0 %vm1460_vm13, %v2166_v28 }
 0x303   :  { %v1517_v45 = vpop.f32.mrf.mxu1 }
 0x304   :  { %v1518_v46 = vadd.f32 %v1517_v45, %v1323_v43 }
 0x305   :  { %v1519_v47 = vpop.f32.mrf.mxu1 }
 0x306   :  { %v1606_v49 = vmax.f32 %v1518_v46, 0.0  ;;  %v1520_v50 = vadd.f32 %v1519_v47, %v1323_v43 }
 0x307   :  { %v1521_v51 = vpop.f32.mrf.mxu1 }
 0x308   :  { %v1612_v52 = vadd.f32 %v1606_v49, %v866_v48  ;;  %v1607_v53 = vmax.f32 %v1520_v50, 0.0 }
 0x309   :  { %v1522_v54 = vpop.f32.mrf.mxu1 }
 0x30a   :  { %v1618_v55 = vmax.f32 %v1612_v52, 0.0  ;;  %v1613_v56 = vadd.f32 %v1607_v53, %v868_v34 }
 0x30c   :  { %1624 = vst [vmem:[#allocation8] sm:$0xff] %v1618_v55  ;;  %v1619_v28 = vmax.f32 %v1613_v56, 0.0 }
 0x30e   :  { %1625 = vst [vmem:[#allocation8 + $0x8] sm:$0xff] %v1619_v28 }
 0x328   :  { %v1599_v61 = vpop.f32.mrf.mxu1 }
 0x329   :  { %v1558_v59 = vpop.f32.mrf.mxu0  ;;  %v1600_v62 = vadd.f32 %v1599_v61, %v1323_v43 }
 0x32a   :  { %v1559_v60 = vadd.f32 %v1558_v59, %v1323_v43  ;;  %v1601_v2 = vpop.f32.mrf.mxu1 }
 0x32b   :  { %v1560_v37 = vpop.f32.mrf.mxu0  ;;  %v1610_v42 = vmax.f32 %v1600_v62, 0.0  ;;  %v1602_v4 = vadd.f32 %v1601_v2, %v1323_v43 }
 0x32c   :  { %v1608_v1 = vmax.f32 %v1559_v60, 0.0  ;;  %v1561_v0 = vadd.f32 %v1560_v37, %v1323_v43  ;;  %v1603_v9 = vpop.f32.mrf.mxu1 }
 0x32d   :  { %v1562_v5 = vpop.f32.mrf.mxu0  ;;  %v1616_v10 = vadd.f32 %v1610_v42, %v952_v3  ;;  %v1611_v12 = vmax.f32 %v1602_v4, 0.0 }
 0x32e   :  { %v1614_v6 = vadd.f32 %v1608_v1, %v909_v63  ;;  %v1609_v8 = vmax.f32 %v1561_v0, 0.0  ;;  %v1604_v16 = vpop.f32.mrf.mxu1 }
 0x32f   :  { %v1563_v13 = vpop.f32.mrf.mxu0  ;;  %v1622_v17 = vmax.f32 %v1616_v10, 0.0  ;;  %v1617_v35 = vadd.f32 %v1611_v12, %v954_v11 }
 0x330   :  { %v1620_v14 = vmax.f32 %v1614_v6, 0.0  ;;  %v1615_v15 = vadd.f32 %v1609_v8, %v911_v7 }
 0x331   :  { %1629 = vst [vmem:[#allocation8 + $0x20] sm:$0xff] %v1622_v17  ;;  %v1623_v19 = vmax.f32 %v1617_v35, 0.0 }
 0x332   :  { %1626 = vst [vmem:[#allocation8 + $0x10] sm:$0xff] %v1620_v14  ;;  %v1621_v18 = vmax.f32 %v1615_v15, 0.0 }
 0x333   :  { %1630 = vst [vmem:[#allocation8 + $0x28] sm:$0xff] %v1623_v19 }
 0x334   :  { %1628 = vst [vmem:[#allocation8 + $0x18] sm:$0xff] %v1621_v18 }
 0x335   :  { %1851 = shalt.err (!%p1848_p9)
}
 0x336   :  { %s1878_s26 = smov 384  }
 0x337   :  { %1642 = dma.vmem_to_hbm [thread:$0]  %s1637_s24, 768, %s2211_s5, [#allocation7], %s1878_s26, %s1878_s26, %s1873_s14  }
 0x338   :  { %1862 = dma.done.wait [#allocation7], 768  }
 0x339   :  { %1863 = vsyncadd [#allocation7], 4294966528 }
 0x33a   :  { %1646 = vsyncpa [#allocation6], 1 }
 0x33b   :  { %1647 = vsyncpa [#allocation7], 1 }

</bundles_post_ra>
